<compile_context>
chip_gen: v7x
topology: tpu7x:2x2x1
jax: 0.10.0
libtpu: 0.0.40
codegen_flags: <defaults>
</compile_context>

<pallas_src>
import functools
import math

import jax
import jax.numpy as jnp
from jax.experimental import pallas as pl
from jax.experimental.pallas import tpu as pltpu

# ----------------------------------------------------------------------------
# Model hyper-parameters (small, synthetic configuration)
# ----------------------------------------------------------------------------
N_SYMBOLS = 40          # len(symbols) + 1
EMBD_DIM = 32           # encoder embedding dim
ATT_DIM = 32            # attention dim
HEADS = 2
FFN_HIDDEN = 64
LATENT_DIM = 16
N_MELS = 16             # n_mel_channels == output_dim
N_SAMPLE = 2
MEL_TEXT_LEN_RATIO = 2.0
CONV_K = 3              # postnet conv kernel
TEMPERATURE = 1.0

_LOG_2PI = math.log(2.0 * math.pi)

_BLK_KEYS = ['wq', 'wk', 'wv', 'wo', 'ln1_g', 'ln1_b',
             'w1', 'b1', 'w2', 'b2', 'ln2_g', 'ln2_b']


def _full_spec(shape):
    nd = len(shape)
    return pl.BlockSpec(shape, lambda i, _n=nd: (0,) * _n)


_SMEM_SPEC = pl.BlockSpec(memory_space=pltpu.MemorySpace.SMEM)


# ----------------------------------------------------------------------------
# In-kernel fused transformer block (shared helper, operates on values + refs)
# ----------------------------------------------------------------------------
def _attn_block(x, mem, lens_ref, blk_refs, heads, temperature, attn_ref):
    """x: (B, Tq, E) value, mem: (B, Tk, E) value, lens_ref: (B,) int32 SMEM ref.

    Key-length bias is built in-kernel from lens_ref.  QKV / output / FFN matmuls
    are folded over batch*time; only scores + softmax are per-batch (unrolled).
    Returns (B, Tq, E); optionally writes attention probs to attn_ref (B, H, Tq, Tk).
    """
    wq = blk_refs[0][...]
    wk = blk_refs[1][...]
    wv = blk_refs[2][...]
    wo = blk_refs[3][...]
    ln1g = blk_refs[4][...]
    ln1b = blk_refs[5][...]
    w1 = blk_refs[6][...]
    b1 = blk_refs[7][...]
    w2 = blk_refs[8][...]
    b2 = blk_refs[9][...]
    ln2g = blk_refs[10][...]
    ln2b = blk_refs[11][...]

    B, Tq, E = x.shape
    Tk = mem.shape[1]
    A = wq.shape[1]
    dh = A // heads
    scale = 1.0 / (temperature * (float(dh) ** 0.5))

    x2 = x.reshape(B * Tq, E)
    m2 = mem.reshape(B * Tk, E)
    q = jnp.dot(x2, wq, preferred_element_type=jnp.float32)    # (B*Tq, A)
    k = jnp.dot(m2, wk, preferred_element_type=jnp.float32)    # (B*Tk, A)
    v = jnp.dot(m2, wv, preferred_element_type=jnp.float32)    # (B*Tk, A)

    col = jax.lax.broadcasted_iota(jnp.int32, (Tq, Tk), 1)
    ctx_rows = []
    for b in range(B):
        qb = q[b * Tq:(b + 1) * Tq, :]
        kb = k[b * Tk:(b + 1) * Tk, :]
        vb = v[b * Tk:(b + 1) * Tk, :]
        bias = jnp.where(col < lens_ref[b], 0.0, -1e9).astype(jnp.float32)
        heads_ctx = []
        for h in range(heads):
            qh = qb[:, h * dh:(h + 1) * dh]
            kh = kb[:, h * dh:(h + 1) * dh]
            vh = vb[:, h * dh:(h + 1) * dh]
            s = jax.lax.dot_general(qh, kh, (((1,), (1,)), ((), ())),
                                    preferred_element_type=jnp.float32)
            s = s * scale + bias
            s = s - jnp.max(s, axis=-1, keepdims=True)
            p = jnp.exp(s)
            attn = p * pl.reciprocal(jnp.sum(p, axis=-1, keepdims=True),
                                     approx=True)
            if attn_ref is not None:
                attn_ref[b, h] = attn
            heads_ctx.append(jnp.dot(attn, vh, preferred_element_type=jnp.float32))
        ctx_rows.append(jnp.concatenate(heads_ctx, axis=-1))          # (Tq, A)
    ctx = jnp.concatenate(ctx_rows, axis=0) if B > 1 else ctx_rows[0]  # (B*Tq, A)
    o = jnp.dot(ctx, wo, preferred_element_type=jnp.float32)          # one wo matmul

    # residual + LayerNorm 1
    hres = x2 + o
    mu1 = jnp.mean(hres, axis=-1, keepdims=True)
    var1 = jnp.mean(jnp.square(hres - mu1), axis=-1, keepdims=True)
    h1 = (hres - mu1) * jax.lax.rsqrt(var1 + 1e-5) * ln1g + ln1b

    # FFN + residual + LayerNorm 2
    f = jnp.maximum(
        jnp.dot(h1, w1, preferred_element_type=jnp.float32) + b1, 0.0)
    f = jnp.dot(f, w2, preferred_element_type=jnp.float32) + b2
    h2 = h1 + f
    mu2 = jnp.mean(h2, axis=-1, keepdims=True)
    var2 = jnp.mean(jnp.square(h2 - mu2), axis=-1, keepdims=True)
    out = (h2 - mu2) * jax.lax.rsqrt(var2 + 1e-5) * ln2g + ln2b
    return out.reshape(B, Tq, E)


# ----------------------------------------------------------------------------
# Fused Pallas kernels
# ----------------------------------------------------------------------------
def _encoder_kernel(lens_ref, emb_ref, pe_ref, *refs, heads, temperature):
    """Text encoder: prenet (2 linears, relu) + PE + self-attn block
    + length-predictor head (masked per-batch score sum)."""
    pw1 = refs[0][...]
    pb1 = refs[1][...]
    pw2 = refs[2][...]
    pb2 = refs[3][...]
    blk = refs[4:16]
    lpw1 = refs[16][...]
    lpb1 = refs[17][...]
    lpw2 = refs[18][...]
    lpb2 = refs[19][...]
    out_ref = refs[20]
    lp_ref = refs[21]

    B, T, E = emb_ref.shape
    x2 = emb_ref[...].reshape(B * T, E)
    h = jnp.maximum(jnp.dot(x2, pw1, preferred_element_type=jnp.float32) + pb1, 0.0)
    h = jnp.maximum(jnp.dot(h, pw2, preferred_element_type=jnp.float32) + pb2, 0.0)
    h3 = h.reshape(B, T, E) + pe_ref[...][None]

    te = _attn_block(h3, h3, lens_ref, blk, heads, temperature, None)
    out_ref[...] = te

    # length-predictor head (operates on text_embd; .detach() is a forward no-op)
    te2 = te.reshape(B * T, E)
    lh = jnp.maximum(
        jnp.dot(te2, lpw1, preferred_element_type=jnp.float32) + lpb1, 0.0)
    ls = jnp.dot(lh, lpw2, preferred_element_type=jnp.float32) + lpb2   # (B*T, 1)
    tio = jax.lax.broadcasted_iota(jnp.int32, (T, 1), 0)
    parts = []
    for b in range(B):
        m = (tio < lens_ref[b]).astype(jnp.float32)
        parts.append(jnp.sum(ls[b * T:(b + 1) * T, :] * m, axis=0, keepdims=True))
    lp_ref[...] = jnp.concatenate(parts, axis=0) if B > 1 else parts[0]


def _stage_kernel(lens_ref, x_ref, mem_ref, pe_ref, *refs,
                  pre_act, heads, temperature, need_attn):
    """Generic fused stage: input linear (+act) + PE + cross-attn block + output
    linear.  Used for the posterior, decoder and prior towers."""
    pre_w = refs[0][...]
    pre_b = refs[1][...]
    blk = refs[2:14]
    out_w = refs[14][...]
    out_b = refs[15][...]
    out_ref = refs[16]
    attn_ref = refs[17] if need_attn else None

    B, Tq, Din = x_ref.shape
    E = pre_w.shape[1]
    Dout = out_w.shape[1]

    x2 = x_ref[...].reshape(B * Tq, Din)
    h = jnp.dot(x2, pre_w, preferred_element_type=jnp.float32) + pre_b
    if pre_act == 'relu':
        h = jnp.maximum(h, 0.0)
    h3 = h.reshape(B, Tq, E) + pe_ref[...][None]

    y3 = _attn_block(h3, mem_ref[...], lens_ref, blk, heads, temperature, attn_ref)

    y2 = y3.reshape(B * Tq, E)
    out = jnp.dot(y2, out_w, preferred_element_type=jnp.float32) + out_b
    out_ref[...] = out.reshape(B, Tq, Dout)


def _postnet_loss_kernel(init_ref, tgt_ref, lens_ref,
                         w1_ref, b1_ref, w2_ref, b2_ref,
                         out_ref, li_ref, lf_ref, *, ksize):
    """Decoder postnet (conv-tanh-conv as single (M, k*C) matmuls) + residual,
    fused with BOTH masked L2 losses (initial & final) against the same targets."""
    x = init_ref[...]                       # (BN, M, D)
    BN, M, D = x.shape
    pad = (ksize - 1) // 2

    def conv(xin, w_ref, b_ref):
        cout = w_ref.shape[2]
        wflat = w_ref[...].reshape(ksize * D, cout)
        rows = []
        for b in range(BN):
            xb = xin[b]                                           # (M, D)
            zp = jnp.zeros((pad, D), jnp.float32)
            xpb = jnp.concatenate([zp, xb, zp], axis=0)           # (M+2p, D)
            slab = jnp.concatenate([xpb[j:j + M, :] for j in range(ksize)],
                                   axis=-1)                       # (M, k*D)
            rows.append(slab)
        stacked = jnp.concatenate(rows, axis=0) if BN > 1 else rows[0]  # (BN*M, k*D)
        y = jnp.dot(stacked, wflat, preferred_element_type=jnp.float32) + b_ref[...]
        return y.reshape(BN, M, cout)

    h = jnp.tanh(conv(x, w1_ref, b1_ref))
    h = conv(h, w2_ref, b2_ref)
    out = x + h
    out_ref[...] = out

    tgt = tgt_ref[...]
    lens = lens_ref[...]                                          # (BN, 1) f32
    ids = jax.lax.broadcasted_iota(jnp.float32, (BN, M), 1)
    mask = (ids < lens).astype(jnp.float32)
    inv = pl.reciprocal(lens, approx=True)
    sq_i = jnp.mean(jnp.square(x - tgt), axis=-1)                 # (BN, M)
    sq_f = jnp.mean(jnp.square(out - tgt), axis=-1)
    li_ref[...] = jnp.sum(sq_i * mask, axis=-1, keepdims=True) * inv
    lf_ref[...] = jnp.sum(sq_f * mask, axis=-1, keepdims=True) * inv


def _dual_logprob_kernel(z_ref, muq_ref, lvq_ref, mup_ref, lvp_ref, lens_ref,
                         q_ref, p_ref):
    """Masked diagonal-Gaussian log-prob of z under BOTH (mu_q, lv_q) and
    (mu_p, lv_p); z and the mask are read once."""
    z = z_ref[...]                         # (N, T, L)
    N, T, _ = z.shape
    lens = lens_ref[...]                   # (N, 1) f32
    ids = jax.lax.broadcasted_iota(jnp.float32, (N, T), 1)
    mask = (ids < lens).astype(jnp.float32)

    def lp(mu, lv):
        e = -0.5 * (jnp.square(z - mu) * jnp.exp(-lv) + lv + _LOG_2PI)
        per_t = jnp.sum(e, axis=-1)                               # (N, T)
        return jnp.sum(per_t * mask, axis=-1, keepdims=True)      # (N, 1)

    q_ref[...] = lp(muq_ref[...], lvq_ref[...])
    p_ref[...] = lp(mup_ref[...], lvp_ref[...])


# ----------------------------------------------------------------------------
# Pallas wrappers (grid=(1,): whole batch per step, weights loaded once)
# ----------------------------------------------------------------------------
def encoder_forward(emb, text_lengths, pe, p):
    B, T, E = emb.shape
    weights = [p['enc_pre_w1'], p['enc_pre_b1'], p['enc_pre_w2'], p['enc_pre_b2']] \
        + [p['enc_blk'][k] for k in _BLK_KEYS] \
        + [p['lp_w1'], p['lp_b1'], p['lp_w2'], p['lp_b2']]
    kern = functools.partial(_encoder_kernel, heads=HEADS, temperature=TEMPERATURE)
    in_specs = [_SMEM_SPEC, _full_spec((B, T, E)), _full_spec((T, E))] \
        + [_full_spec(w.shape) for w in weights]
    out_specs = [_full_spec((B, T, E)), _full_spec((B, 1))]
    out_shape = [jax.ShapeDtypeStruct((B, T, E), jnp.float32),
                 jax.ShapeDtypeStruct((B, 1), jnp.float32)]
    te, lp_sum = pl.pallas_call(
        kern, grid=(1,), in_specs=in_specs, out_specs=out_specs,
        out_shape=out_shape)(text_lengths, emb, pe, *weights)
    return te, lp_sum


def stage_forward(x, mem, lengths, pe, pre_w, pre_b, blk, out_w, out_b,
                  pre_act=None, need_attn=False):
    B, Tq, Din = x.shape
    Tk, Em = mem.shape[1], mem.shape[2]
    E = pre_w.shape[1]
    Dout = out_w.shape[1]
    weights = [pre_w, pre_b] + [blk[k] for k in _BLK_KEYS] + [out_w, out_b]
    kern = functools.partial(_stage_kernel, pre_act=pre_act, heads=HEADS,
                             temperature=TEMPERATURE, need_attn=need_attn)
    in_specs = [_SMEM_SPEC, _full_spec((B, Tq, Din)), _full_spec((B, Tk, Em)),
                _full_spec((Tq, E))] + [_full_spec(w.shape) for w in weights]
    out_specs = [_full_spec((B, Tq, Dout))]
    out_shape = [jax.ShapeDtypeStruct((B, Tq, Dout), jnp.float32)]
    if need_attn:
        out_specs.append(_full_spec((B, HEADS, Tq, Tk)))
        out_shape.append(jax.ShapeDtypeStruct((B, HEADS, Tq, Tk), jnp.float32))
    res = pl.pallas_call(kern, grid=(1,), in_specs=in_specs,
                         out_specs=out_specs, out_shape=out_shape)(
        lengths, x, mem, pe, *weights)
    if need_attn:
        return res[0], res[1]
    return res[0], None


def postnet_and_loss(decoded_initial, targets, lens_f, p):
    BN, M, D = decoded_initial.shape
    kern = functools.partial(_postnet_loss_kernel, ksize=CONV_K)
    weights = [p['pn1_w'], p['pn1_b'], p['pn2_w'], p['pn2_b']]
    in_specs = [_full_spec((BN, M, D)), _full_spec((BN, M, D)),
                _full_spec((BN, 1))] + [_full_spec(w.shape) for w in weights]
    out_specs = [_full_spec((BN, M, D)), _full_spec((BN, 1)), _full_spec((BN, 1))]
    out_shape = [jax.ShapeDtypeStruct((BN, M, D), jnp.float32),
                 jax.ShapeDtypeStruct((BN, 1), jnp.float32),
                 jax.ShapeDtypeStruct((BN, 1), jnp.float32)]
    return pl.pallas_call(kern, grid=(1,), in_specs=in_specs,
                          out_specs=out_specs, out_shape=out_shape)(
        decoded_initial, targets, lens_f, *weights)


def dual_gauss_logprob(z, mu_q, lv_q, mu_p, lv_p, lens_f):
    N, T, L = z.shape
    in_specs = [_full_spec((N, T, L)) for _ in range(5)] + [_full_spec((N, 1))]
    out_specs = [_full_spec((N, 1)), _full_spec((N, 1))]
    out_shape = [jax.ShapeDtypeStruct((N, 1), jnp.float32),
                 jax.ShapeDtypeStruct((N, 1), jnp.float32)]
    return pl.pallas_call(_dual_logprob_kernel, grid=(1,), in_specs=in_specs,
                          out_specs=out_specs, out_shape=out_shape)(
        z, mu_q, lv_q, mu_p, lv_p, lens_f)


# ----------------------------------------------------------------------------
# Plain-JAX glue helpers
# ----------------------------------------------------------------------------
def sinusoid_pe(length, dim, step=1.0):
    pos = jnp.arange(length, dtype=jnp.float32)[:, None] * step
    i = jnp.arange(dim // 2, dtype=jnp.float32)[None, :]
    angle = pos / jnp.power(10000.0, 2.0 * i / dim)
    return jnp.concatenate([jnp.sin(angle), jnp.cos(angle)], axis=-1)


def init_params(key):
    E, A, F, L, D, rf, k = EMBD_DIM, ATT_DIM, FFN_HIDDEN, LATENT_DIM, N_MELS, 2, CONV_K
    keys = iter(jax.random.split(key, 64))

    def nrm(shape, scale=0.05):
        return (scale * jax.random.normal(next(keys), shape)).astype(jnp.float32)

    def blk():
        return dict(
            wq=nrm((E, A)), wk=nrm((E, A)), wv=nrm((E, A)), wo=nrm((A, E)),
            ln1_g=jnp.ones((1, E), jnp.float32), ln1_b=jnp.zeros((1, E), jnp.float32),
            w1=nrm((E, F)), b1=jnp.zeros((1, F), jnp.float32),
            w2=nrm((F, E)), b2=jnp.zeros((1, E), jnp.float32),
            ln2_g=jnp.ones((1, E), jnp.float32), ln2_b=jnp.zeros((1, E), jnp.float32))

    return dict(
        embed=nrm((N_SYMBOLS, E), 0.1),
        enc_pre_w1=nrm((E, E)), enc_pre_b1=jnp.zeros((1, E), jnp.float32),
        enc_pre_w2=nrm((E, E)), enc_pre_b2=jnp.zeros((1, E), jnp.float32),
        enc_blk=blk(),
        lp_w1=nrm((E, E)), lp_b1=jnp.zeros((1, E), jnp.float32),
        lp_w2=nrm((E, 1)), lp_b2=jnp.zeros((1, 1), jnp.float32),
        post_pre_w=nrm((D, E)), post_pre_b=jnp.zeros((1, E), jnp.float32),
        post_blk=blk(),
        post_out_w=nrm((E, 2 * L)), post_out_b=jnp.zeros((1, 2 * L), jnp.float32),
        dec_in_w=nrm((L, E)), dec_in_b=jnp.zeros((1, E), jnp.float32),
        dec_blk=blk(),
        dec_out_w=nrm((E, D * rf)), dec_out_b=jnp.zeros((1, D * rf), jnp.float32),
        pn1_w=nrm((k, D, D)), pn1_b=jnp.zeros((1, D), jnp.float32),
        pn2_w=nrm((k, D, D)), pn2_b=jnp.zeros((1, D), jnp.float32),
        prior_in_w=nrm((L, E)), prior_in_b=jnp.zeros((1, E), jnp.float32),
        prior_blk=blk(),
        prior_out_w=nrm((E, 2 * L)), prior_out_b=jnp.zeros((1, 2 * L), jnp.float32),
    )


# ----------------------------------------------------------------------------
# VAENAR forward pass
# ----------------------------------------------------------------------------
def vaenar_forward(params, speakers, inputs, text_lengths, max_src_len,
                   mel_targets, mel_lengths, max_mel_len,
                   reduction_factor=2, reduce_loss=False, rng_key=None):
    del speakers, max_src_len, max_mel_len  # unused (kept for signature parity)
    B, M, D = mel_targets.shape
    T = inputs.shape[1]
    E, L = EMBD_DIM, LATENT_DIM
    rf = reduction_factor
    n_sample = N_SAMPLE
    if rng_key is None:
        rng_key = jax.random.PRNGKey(1234)

    reduced_mels = mel_targets[:, ::rf, :]                        # (B, R, D)
    reduced_mel_lens = (mel_lengths + rf - 1) // rf
    R = reduced_mels.shape[1]
    text_pos_step = MEL_TEXT_LEN_RATIO / float(rf)

    # -------- text encoder + length-predictor head (one fused kernel) --------
    emb = jnp.take(params['embed'], inputs, axis=0)               # (B, T, E)
    pe_text = sinusoid_pe(T, E, text_pos_step)
    text_embd, lp_sum = encoder_forward(emb, text_lengths, pe_text, params)
    predicted_lengths = jax.nn.softplus(lp_sum[:, 0]) + 1.0
    length_loss = jnp.square(jnp.log(predicted_lengths)
                             - jnp.log(mel_lengths.astype(jnp.float32)))
    if reduce_loss:
        length_loss = jnp.mean(length_loss)

    # -------- posterior (fused prenet + block + stats projection) --------
    pe_r = sinusoid_pe(R, E, 1.0)
    stats, _ = stage_forward(reduced_mels, text_embd, text_lengths, pe_r,
                             params['post_pre_w'], params['post_pre_b'],
                             params['post_blk'],
                             params['post_out_w'], params['post_out_b'],
                             pre_act='relu', need_attn=False)
    logvar, mu = stats[..., :L], stats[..., L:]

    # -------- reparameterize --------
    eps = jax.random.normal(rng_key, (B, n_sample, R, L), dtype=jnp.float32)
    samples = mu[:, None] + jnp.exp(0.5 * logvar[:, None]) * eps   # (B, n, R, L)

    BN = B * n_sample
    batched_samples = samples.reshape(BN, R, L)
    mu_t = jnp.tile(mu[:, None], (1, n_sample, 1, 1)).reshape(BN, R, L)
    lv_t = jnp.tile(logvar[:, None], (1, n_sample, 1, 1)).reshape(BN, R, L)
    batched_r_mel_lens = jnp.tile(reduced_mel_lens[:, None], (1, n_sample)).reshape(-1)
    batched_text_embd = jnp.tile(text_embd[:, None], (1, n_sample, 1, 1)
                                 ).reshape(BN, T, E)
    batched_mel_targets = jnp.tile(mel_targets[:, None], (1, n_sample, 1, 1)
                                   ).reshape(BN, M, D)
    batched_mel_lengths = jnp.tile(mel_lengths[:, None], (1, n_sample)).reshape(-1)
    batched_text_lengths = jnp.tile(text_lengths[:, None], (1, n_sample)).reshape(-1)

    # -------- decoder transformer (one fused kernel, alignments kept) --------
    dec_init, dec_alignments = stage_forward(
        batched_samples, batched_text_embd, batched_text_lengths, pe_r,
        params['dec_in_w'], params['dec_in_b'], params['dec_blk'],
        params['dec_out_w'], params['dec_out_b'],
        pre_act=None, need_attn=True)
    decoded_initial = dec_init.reshape(BN, R * rf, D)[:, :M, :]

    # -------- postnet + residual + both masked L2 losses (one kernel) --------
    lens_safe = jnp.maximum(batched_mel_lengths.astype(jnp.float32), 1.0
                            ).reshape(BN, 1)
    decoded_outs, li, lf = postnet_and_loss(decoded_initial, batched_mel_targets,
                                            lens_safe, params)
    initial_l2_loss = jnp.mean(li[:, 0].reshape(B, n_sample), axis=-1)
    l2_loss = jnp.mean(lf[:, 0].reshape(B, n_sample), axis=-1) + initial_l2_loss
    if reduce_loss:
        l2_loss = jnp.mean(l2_loss)

    # -------- prior stats (conditional-Gaussian approximation of the flow) ----
    pstats, _ = stage_forward(batched_samples, batched_text_embd,
                              batched_text_lengths, pe_r,
                              params['prior_in_w'], params['prior_in_b'],
                              params['prior_blk'],
                              params['prior_out_w'], params['prior_out_b'],
                              pre_act=None, need_attn=False)
    lv_p, mu_p = pstats[..., :L], pstats[..., L:]   # same (logvar, mu) split as posterior

    # -------- posterior & prior log-probabilities (one fused kernel) --------
    r_lens_safe = jnp.maximum(batched_r_mel_lens.astype(jnp.float32), 1.0
                              ).reshape(BN, 1)
    plq, plp = dual_gauss_logprob(batched_samples, mu_t, lv_t, mu_p, lv_p,
                                  r_lens_safe)
    posterior_logprobs = plq[:, 0].reshape(B, n_sample)
    prior_logprobs = plp[:, 0].reshape(B, n_sample)

    # -------- KL --------
    kl_divergence = jnp.mean(posterior_logprobs - prior_logprobs, axis=1)
    if reduce_loss:
        kl_divergence = jnp.mean(kl_divergence)

    return (decoded_outs, l2_loss, kl_divergence, length_loss, dec_alignments,
            reduced_mel_lens, posterior_logprobs, prior_logprobs)


# ----------------------------------------------------------------------------
# Main
# ----------------------------------------------------------------------------
if __name__ == "__main__":
    key = jax.random.PRNGKey(0)
    k_param, k_txt, k_mel, k_eps = jax.random.split(key, 4)

    B, T, M, D = 2, 8, 16, N_MELS
    params = init_params(k_param)

    speakers = jnp.zeros((B,), jnp.int32)
    inputs = jax.random.randint(k_txt, (B, T), 1, N_SYMBOLS).astype(jnp.int32)
    text_lengths = jnp.array([8, 6], jnp.int32)
    mel_targets = jax.random.normal(k_mel, (B, M, D), dtype=jnp.float32)
    mel_lengths = jnp.array([16, 12], jnp.int32)

    outs = vaenar_forward(params, speakers, inputs, text_lengths, T,
                          mel_targets, mel_lengths, M,
                          reduction_factor=2, reduce_loss=False, rng_key=k_eps)
    (decoded_outs, l2_loss, kl_div, length_loss, dec_alignments,
     reduced_mel_lens, posterior_logprobs, prior_logprobs) = outs

    jax.block_until_ready(decoded_outs)
    jax.block_until_ready(l2_loss)

    assert decoded_outs.shape == (B * N_SAMPLE, M, D)
    assert l2_loss.shape == (B,)
    assert kl_div.shape == (B,)
    assert length_loss.shape == (B,)
    assert dec_alignments.shape == (B * N_SAMPLE, HEADS, M // 2, T)
    assert posterior_logprobs.shape == (B, N_SAMPLE)
    assert prior_logprobs.shape == (B, N_SAMPLE)
    for arr in (decoded_outs, l2_loss, kl_div, length_loss,
                posterior_logprobs, prior_logprobs):
        assert bool(jnp.all(jnp.isfinite(arr)))

    print("KERNEL_OK")
</pallas_src>

<mosaic_0001>
module attributes {stable_mosaic.version = 11 : i64} {
  func.func @_encoder_kernel(%arg0: i32, %arg1: memref<2xi32, #tpu.memory_space<smem>>, %arg2: memref<2x8x32xf32, #tpu.memory_space<vmem>>, %arg3: memref<8x32xf32, #tpu.memory_space<vmem>>, %arg4: memref<32x32xf32, #tpu.memory_space<vmem>>, %arg5: memref<1x32xf32, #tpu.memory_space<vmem>>, %arg6: memref<32x32xf32, #tpu.memory_space<vmem>>, %arg7: memref<1x32xf32, #tpu.memory_space<vmem>>, %arg8: memref<32x32xf32, #tpu.memory_space<vmem>>, %arg9: memref<32x32xf32, #tpu.memory_space<vmem>>, %arg10: memref<32x32xf32, #tpu.memory_space<vmem>>, %arg11: memref<32x32xf32, #tpu.memory_space<vmem>>, %arg12: memref<1x32xf32, #tpu.memory_space<vmem>>, %arg13: memref<1x32xf32, #tpu.memory_space<vmem>>, %arg14: memref<32x64xf32, #tpu.memory_space<vmem>>, %arg15: memref<1x64xf32, #tpu.memory_space<vmem>>, %arg16: memref<64x32xf32, #tpu.memory_space<vmem>>, %arg17: memref<1x32xf32, #tpu.memory_space<vmem>>, %arg18: memref<1x32xf32, #tpu.memory_space<vmem>>, %arg19: memref<1x32xf32, #tpu.memory_space<vmem>>, %arg20: memref<32x32xf32, #tpu.memory_space<vmem>>, %arg21: memref<1x32xf32, #tpu.memory_space<vmem>>, %arg22: memref<32x1xf32, #tpu.memory_space<vmem>>, %arg23: memref<1x1xf32, #tpu.memory_space<vmem>>, %arg24: memref<2x8x32xf32, #tpu.memory_space<vmem>>, %arg25: memref<2x1xf32, #tpu.memory_space<vmem>>) attributes {dimension_semantics = [#tpu.dimension_semantics<arbitrary>], iteration_bounds = array<i64: 1>, scalar_prefetch = 0 : i64, scratch_operands = 0 : i64, tpu.core_type = #tpu.core_type<tc>, window_params = [{transform_indices = @transform_0, window_bounds = array<i64: 2>}, {pipeline_mode = #tpu.pipeline_mode<synchronous>, transform_indices = @transform_1, window_bounds = array<i64: 2, 8, 32>}, {pipeline_mode = #tpu.pipeline_mode<synchronous>, transform_indices = @transform_2, window_bounds = array<i64: 8, 32>}, {pipeline_mode = #tpu.pipeline_mode<synchronous>, transform_indices = @transform_3, window_bounds = array<i64: 32, 32>}, {pipeline_mode = #tpu.pipeline_mode<synchronous>, transform_indices = @transform_4, window_bounds = array<i64: 1, 32>}, {pipeline_mode = #tpu.pipeline_mode<synchronous>, transform_indices = @transform_5, window_bounds = array<i64: 32, 32>}, {pipeline_mode = #tpu.pipeline_mode<synchronous>, transform_indices = @transform_6, window_bounds = array<i64: 1, 32>}, {pipeline_mode = #tpu.pipeline_mode<synchronous>, transform_indices = @transform_7, window_bounds = array<i64: 32, 32>}, {pipeline_mode = #tpu.pipeline_mode<synchronous>, transform_indices = @transform_8, window_bounds = array<i64: 32, 32>}, {pipeline_mode = #tpu.pipeline_mode<synchronous>, transform_indices = @transform_9, window_bounds = array<i64: 32, 32>}, {pipeline_mode = #tpu.pipeline_mode<synchronous>, transform_indices = @transform_10, window_bounds = array<i64: 32, 32>}, {pipeline_mode = #tpu.pipeline_mode<synchronous>, transform_indices = @transform_11, window_bounds = array<i64: 1, 32>}, {pipeline_mode = #tpu.pipeline_mode<synchronous>, transform_indices = @transform_12, window_bounds = array<i64: 1, 32>}, {pipeline_mode = #tpu.pipeline_mode<synchronous>, transform_indices = @transform_13, window_bounds = array<i64: 32, 64>}, {pipeline_mode = #tpu.pipeline_mode<synchronous>, transform_indices = @transform_14, window_bounds = array<i64: 1, 64>}, {pipeline_mode = #tpu.pipeline_mode<synchronous>, transform_indices = @transform_15, window_bounds = array<i64: 64, 32>}, {pipeline_mode = #tpu.pipeline_mode<synchronous>, transform_indices = @transform_16, window_bounds = array<i64: 1, 32>}, {pipeline_mode = #tpu.pipeline_mode<synchronous>, transform_indices = @transform_17, window_bounds = array<i64: 1, 32>}, {pipeline_mode = #tpu.pipeline_mode<synchronous>, transform_indices = @transform_18, window_bounds = array<i64: 1, 32>}, {pipeline_mode = #tpu.pipeline_mode<synchronous>, transform_indices = @transform_19, window_bounds = array<i64: 32, 32>}, {pipeline_mode = #tpu.pipeline_mode<synchronous>, transform_indices = @transform_20, window_bounds = array<i64: 1, 32>}, {pipeline_mode = #tpu.pipeline_mode<synchronous>, transform_indices = @transform_21, window_bounds = array<i64: 32, 1>}, {pipeline_mode = #tpu.pipeline_mode<synchronous>, transform_indices = @transform_22, window_bounds = array<i64: 1, 1>}, {pipeline_mode = #tpu.pipeline_mode<synchronous>, transform_indices = @transform_23, window_bounds = array<i64: 2, 8, 32>}, {pipeline_mode = #tpu.pipeline_mode<synchronous>, transform_indices = @transform_24, window_bounds = array<i64: 2, 1>}]} {
    %c0 = arith.constant 0 : index
    %c0_0 = arith.constant 0 : index
    %0 = vector.load %arg4[%c0, %c0_0] : memref<32x32xf32, #tpu.memory_space<vmem>>, vector<32x32xf32>
    %c0_1 = arith.constant 0 : index
    %c0_2 = arith.constant 0 : index
    %1 = vector.load %arg5[%c0_1, %c0_2] : memref<1x32xf32, #tpu.memory_space<vmem>>, vector<1x32xf32>
    %c0_3 = arith.constant 0 : index
    %c0_4 = arith.constant 0 : index
    %2 = vector.load %arg6[%c0_3, %c0_4] : memref<32x32xf32, #tpu.memory_space<vmem>>, vector<32x32xf32>
    %c0_5 = arith.constant 0 : index
    %c0_6 = arith.constant 0 : index
    %3 = vector.load %arg7[%c0_5, %c0_6] : memref<1x32xf32, #tpu.memory_space<vmem>>, vector<1x32xf32>
    %c0_7 = arith.constant 0 : index
    %c0_8 = arith.constant 0 : index
    %4 = vector.load %arg20[%c0_7, %c0_8] : memref<32x32xf32, #tpu.memory_space<vmem>>, vector<32x32xf32>
    %c0_9 = arith.constant 0 : index
    %c0_10 = arith.constant 0 : index
    %5 = vector.load %arg21[%c0_9, %c0_10] : memref<1x32xf32, #tpu.memory_space<vmem>>, vector<1x32xf32>
    %c0_11 = arith.constant 0 : index
    %c0_12 = arith.constant 0 : index
    %6 = vector.load %arg22[%c0_11, %c0_12] : memref<32x1xf32, #tpu.memory_space<vmem>>, vector<32x1xf32>
    %c0_13 = arith.constant 0 : index
    %c0_14 = arith.constant 0 : index
    %7 = vector.load %arg23[%c0_13, %c0_14] : memref<1x1xf32, #tpu.memory_space<vmem>>, vector<1x1xf32>
    %c0_15 = arith.constant 0 : index
    %c0_16 = arith.constant 0 : index
    %c0_17 = arith.constant 0 : index
    %8 = vector.load %arg2[%c0_15, %c0_16, %c0_17] : memref<2x8x32xf32, #tpu.memory_space<vmem>>, vector<2x8x32xf32>
    %9 = vector.shape_cast %8 : vector<2x8x32xf32> to vector<16x32xf32>
    %cst = arith.constant dense<0.000000e+00> : vector<16x32xf32>
    %10 = tpu.matmul %9, %0, %cst {dimension_numbers = #tpu.dot_dimension_numbers<[1], [0], [0], [1], [0, 0, 1, 1], [], []>} : vector<16x32xf32>, vector<32x32xf32>, vector<16x32xf32> -> vector<16x32xf32>
    %11 = vector.broadcast %1 : vector<1x32xf32> to vector<16x32xf32>
    %12 = arith.addf %10, %11 : vector<16x32xf32>
    %cst_18 = arith.constant 0.000000e+00 : f32
    %13 = vector.broadcast %cst_18 : f32 to vector<16x32xf32>
    %14 = arith.maximumf %12, %13 : vector<16x32xf32>
    %cst_19 = arith.constant dense<0.000000e+00> : vector<16x32xf32>
    %15 = tpu.matmul %14, %2, %cst_19 {dimension_numbers = #tpu.dot_dimension_numbers<[1], [0], [0], [1], [0, 0, 1, 1], [], []>} : vector<16x32xf32>, vector<32x32xf32>, vector<16x32xf32> -> vector<16x32xf32>
    %16 = vector.broadcast %3 : vector<1x32xf32> to vector<16x32xf32>
    %17 = arith.addf %15, %16 : vector<16x32xf32>
    %cst_20 = arith.constant 0.000000e+00 : f32
    %18 = vector.broadcast %cst_20 : f32 to vector<16x32xf32>
    %19 = arith.maximumf %17, %18 : vector<16x32xf32>
    %20 = vector.shape_cast %19 : vector<16x32xf32> to vector<2x8x32xf32>
    %c0_21 = arith.constant 0 : index
    %c0_22 = arith.constant 0 : index
    %21 = vector.load %arg3[%c0_21, %c0_22] : memref<8x32xf32, #tpu.memory_space<vmem>>, vector<8x32xf32>
    %22 = vector.shape_cast %21 : vector<8x32xf32> to vector<1x8x32xf32>
    %23 = vector.broadcast %22 : vector<1x8x32xf32> to vector<2x8x32xf32>
    %24 = arith.addf %20, %23 : vector<2x8x32xf32>
    %c0_23 = arith.constant 0 : index
    %c0_24 = arith.constant 0 : index
    %25 = vector.load %arg8[%c0_23, %c0_24] : memref<32x32xf32, #tpu.memory_space<vmem>>, vector<32x32xf32>
    %c0_25 = arith.constant 0 : index
    %c0_26 = arith.constant 0 : index
    %26 = vector.load %arg9[%c0_25, %c0_26] : memref<32x32xf32, #tpu.memory_space<vmem>>, vector<32x32xf32>
    %c0_27 = arith.constant 0 : index
    %c0_28 = arith.constant 0 : index
    %27 = vector.load %arg10[%c0_27, %c0_28] : memref<32x32xf32, #tpu.memory_space<vmem>>, vector<32x32xf32>
    %c0_29 = arith.constant 0 : index
    %c0_30 = arith.constant 0 : index
    %28 = vector.load %arg11[%c0_29, %c0_30] : memref<32x32xf32, #tpu.memory_space<vmem>>, vector<32x32xf32>
    %c0_31 = arith.constant 0 : index
    %c0_32 = arith.constant 0 : index
    %29 = vector.load %arg12[%c0_31, %c0_32] : memref<1x32xf32, #tpu.memory_space<vmem>>, vector<1x32xf32>
    %c0_33 = arith.constant 0 : index
    %c0_34 = arith.constant 0 : index
    %30 = vector.load %arg13[%c0_33, %c0_34] : memref<1x32xf32, #tpu.memory_space<vmem>>, vector<1x32xf32>
    %c0_35 = arith.constant 0 : index
    %c0_36 = arith.constant 0 : index
    %31 = vector.load %arg14[%c0_35, %c0_36] : memref<32x64xf32, #tpu.memory_space<vmem>>, vector<32x64xf32>
    %c0_37 = arith.constant 0 : index
    %c0_38 = arith.constant 0 : index
    %32 = vector.load %arg15[%c0_37, %c0_38] : memref<1x64xf32, #tpu.memory_space<vmem>>, vector<1x64xf32>
    %c0_39 = arith.constant 0 : index
    %c0_40 = arith.constant 0 : index
    %33 = vector.load %arg16[%c0_39, %c0_40] : memref<64x32xf32, #tpu.memory_space<vmem>>, vector<64x32xf32>
    %c0_41 = arith.constant 0 : index
    %c0_42 = arith.constant 0 : index
    %34 = vector.load %arg17[%c0_41, %c0_42] : memref<1x32xf32, #tpu.memory_space<vmem>>, vector<1x32xf32>
    %c0_43 = arith.constant 0 : index
    %c0_44 = arith.constant 0 : index
    %35 = vector.load %arg18[%c0_43, %c0_44] : memref<1x32xf32, #tpu.memory_space<vmem>>, vector<1x32xf32>
    %c0_45 = arith.constant 0 : index
    %c0_46 = arith.constant 0 : index
    %36 = vector.load %arg19[%c0_45, %c0_46] : memref<1x32xf32, #tpu.memory_space<vmem>>, vector<1x32xf32>
    %37 = vector.shape_cast %24 : vector<2x8x32xf32> to vector<16x32xf32>
    %38 = vector.shape_cast %24 : vector<2x8x32xf32> to vector<16x32xf32>
    %cst_47 = arith.constant dense<0.000000e+00> : vector<16x32xf32>
    %39 = tpu.matmul %37, %25, %cst_47 {dimension_numbers = #tpu.dot_dimension_numbers<[1], [0], [0], [1], [0, 0, 1, 1], [], []>} : vector<16x32xf32>, vector<32x32xf32>, vector<16x32xf32> -> vector<16x32xf32>
    %cst_48 = arith.constant dense<0.000000e+00> : vector<16x32xf32>
    %40 = tpu.matmul %38, %26, %cst_48 {dimension_numbers = #tpu.dot_dimension_numbers<[1], [0], [0], [1], [0, 0, 1, 1], [], []>} : vector<16x32xf32>, vector<32x32xf32>, vector<16x32xf32> -> vector<16x32xf32>
    %cst_49 = arith.constant dense<0.000000e+00> : vector<16x32xf32>
    %41 = tpu.matmul %38, %27, %cst_49 {dimension_numbers = #tpu.dot_dimension_numbers<[1], [0], [0], [1], [0, 0, 1, 1], [], []>} : vector<16x32xf32>, vector<32x32xf32>, vector<16x32xf32> -> vector<16x32xf32>
    %42 = tpu.iota {dimensions = array<i32: 1>} : vector<8x8xi32>
    %43 = vector.extract_strided_slice %39 {offsets = [0, 0], sizes = [8, 32], strides = [1, 1]} : vector<16x32xf32> to vector<8x32xf32>
    %44 = vector.extract_strided_slice %40 {offsets = [0, 0], sizes = [8, 32], strides = [1, 1]} : vector<16x32xf32> to vector<8x32xf32>
    %45 = vector.extract_strided_slice %41 {offsets = [0, 0], sizes = [8, 32], strides = [1, 1]} : vector<16x32xf32> to vector<8x32xf32>
    %c0_50 = arith.constant 0 : index
    %46 = memref.load %arg1[%c0_50] : memref<2xi32, #tpu.memory_space<smem>>
    %47 = vector.broadcast %46 : i32 to vector<8x8xi32>
    %48 = arith.cmpi slt, %42, %47 : vector<8x8xi32>
    %cst_51 = arith.constant 0.000000e+00 : f32
    %cst_52 = arith.constant -1.000000e+09 : f32
    %49 = vector.broadcast %cst_51 : f32 to vector<8x8xf32>
    %50 = vector.broadcast %cst_52 : f32 to vector<8x8xf32>
    %51 = arith.select %48, %49, %50 : vector<8x8xi1>, vector<8x8xf32>
    %52 = vector.extract_strided_slice %43 {offsets = [0, 0], sizes = [8, 16], strides = [1, 1]} : vector<8x32xf32> to vector<8x16xf32>
    %53 = vector.extract_strided_slice %44 {offsets = [0, 0], sizes = [8, 16], strides = [1, 1]} : vector<8x32xf32> to vector<8x16xf32>
    %54 = vector.extract_strided_slice %45 {offsets = [0, 0], sizes = [8, 16], strides = [1, 1]} : vector<8x32xf32> to vector<8x16xf32>
    %cst_53 = arith.constant dense<0.000000e+00> : vector<8x8xf32>
    %55 = tpu.matmul %52, %53, %cst_53 {dimension_numbers = #tpu.dot_dimension_numbers<[1], [1], [0], [0], [0, 0, 1, 0], [], []>} : vector<8x16xf32>, vector<8x16xf32>, vector<8x8xf32> -> vector<8x8xf32>
    %cst_54 = arith.constant 2.500000e-01 : f32
    %56 = vector.broadcast %cst_54 : f32 to vector<8x8xf32>
    %57 = arith.mulf %55, %56 : vector<8x8xf32>
    %58 = arith.addf %57, %51 : vector<8x8xf32>
    %cst_55 = arith.constant dense<0xFF800000> : vector<8xf32>
    %59 = vector.multi_reduction <maximumf>, %58, %cst_55 [1] : vector<8x8xf32> to vector<8xf32>
    %60 = vector.shape_cast %59 : vector<8xf32> to vector<8x1xf32>
    %61 = vector.broadcast %60 : vector<8x1xf32> to vector<8x8xf32>
    %62 = arith.subf %58, %61 : vector<8x8xf32>
    %63 = math.exp %62 : vector<8x8xf32>
    %cst_56 = arith.constant dense<0.000000e+00> : vector<8xf32>
    %64 = vector.multi_reduction <add>, %63, %cst_56 [1] : vector<8x8xf32> to vector<8xf32>
    %65 = vector.shape_cast %64 : vector<8xf32> to vector<8x1xf32>
    %66 = tpu.reciprocal %65 {approx = true} : vector<8x1xf32> -> vector<8x1xf32>
    %67 = vector.broadcast %66 : vector<8x1xf32> to vector<8x8xf32>
    %68 = arith.mulf %63, %67 : vector<8x8xf32>
    %cst_57 = arith.constant dense<0.000000e+00> : vector<8x16xf32>
    %69 = tpu.matmul %68, %54, %cst_57 {dimension_numbers = #tpu.dot_dimension_numbers<[1], [0], [0], [1], [0, 0, 1, 1], [], []>} : vector<8x8xf32>, vector<8x16xf32>, vector<8x16xf32> -> vector<8x16xf32>
    %70 = vector.extract_strided_slice %43 {offsets = [0, 16], sizes = [8, 16], strides = [1, 1]} : vector<8x32xf32> to vector<8x16xf32>
    %71 = vector.extract_strided_slice %44 {offsets = [0, 16], sizes = [8, 16], strides = [1, 1]} : vector<8x32xf32> to vector<8x16xf32>
    %72 = vector.extract_strided_slice %45 {offsets = [0, 16], sizes = [8, 16], strides = [1, 1]} : vector<8x32xf32> to vector<8x16xf32>
    %cst_58 = arith.constant dense<0.000000e+00> : vector<8x8xf32>
    %73 = tpu.matmul %70, %71, %cst_58 {dimension_numbers = #tpu.dot_dimension_numbers<[1], [1], [0], [0], [0, 0, 1, 0], [], []>} : vector<8x16xf32>, vector<8x16xf32>, vector<8x8xf32> -> vector<8x8xf32>
    %cst_59 = arith.constant 2.500000e-01 : f32
    %74 = vector.broadcast %cst_59 : f32 to vector<8x8xf32>
    %75 = arith.mulf %73, %74 : vector<8x8xf32>
    %76 = arith.addf %75, %51 : vector<8x8xf32>
    %cst_60 = arith.constant dense<0xFF800000> : vector<8xf32>
    %77 = vector.multi_reduction <maximumf>, %76, %cst_60 [1] : vector<8x8xf32> to vector<8xf32>
    %78 = vector.shape_cast %77 : vector<8xf32> to vector<8x1xf32>
    %79 = vector.broadcast %78 : vector<8x1xf32> to vector<8x8xf32>
    %80 = arith.subf %76, %79 : vector<8x8xf32>
    %81 = math.exp %80 : vector<8x8xf32>
    %cst_61 = arith.constant dense<0.000000e+00> : vector<8xf32>
    %82 = vector.multi_reduction <add>, %81, %cst_61 [1] : vector<8x8xf32> to vector<8xf32>
    %83 = vector.shape_cast %82 : vector<8xf32> to vector<8x1xf32>
    %84 = tpu.reciprocal %83 {approx = true} : vector<8x1xf32> -> vector<8x1xf32>
    %85 = vector.broadcast %84 : vector<8x1xf32> to vector<8x8xf32>
    %86 = arith.mulf %81, %85 : vector<8x8xf32>
    %cst_62 = arith.constant dense<0.000000e+00> : vector<8x16xf32>
    %87 = tpu.matmul %86, %72, %cst_62 {dimension_numbers = #tpu.dot_dimension_numbers<[1], [0], [0], [1], [0, 0, 1, 1], [], []>} : vector<8x8xf32>, vector<8x16xf32>, vector<8x16xf32> -> vector<8x16xf32>
    %88 = tpu.concatenate %69, %87 in 1 : vector<8x16xf32>, vector<8x16xf32> -> vector<8x32xf32>
    %89 = vector.extract_strided_slice %39 {offsets = [8, 0], sizes = [8, 32], strides = [1, 1]} : vector<16x32xf32> to vector<8x32xf32>
    %90 = vector.extract_strided_slice %40 {offsets = [8, 0], sizes = [8, 32], strides = [1, 1]} : vector<16x32xf32> to vector<8x32xf32>
    %91 = vector.extract_strided_slice %41 {offsets = [8, 0], sizes = [8, 32], strides = [1, 1]} : vector<16x32xf32> to vector<8x32xf32>
    %c1 = arith.constant 1 : index
    %92 = memref.load %arg1[%c1] : memref<2xi32, #tpu.memory_space<smem>>
    %93 = vector.broadcast %92 : i32 to vector<8x8xi32>
    %94 = arith.cmpi slt, %42, %93 : vector<8x8xi32>
    %cst_63 = arith.constant 0.000000e+00 : f32
    %cst_64 = arith.constant -1.000000e+09 : f32
    %95 = vector.broadcast %cst_63 : f32 to vector<8x8xf32>
    %96 = vector.broadcast %cst_64 : f32 to vector<8x8xf32>
    %97 = arith.select %94, %95, %96 : vector<8x8xi1>, vector<8x8xf32>
    %98 = vector.extract_strided_slice %89 {offsets = [0, 0], sizes = [8, 16], strides = [1, 1]} : vector<8x32xf32> to vector<8x16xf32>
    %99 = vector.extract_strided_slice %90 {offsets = [0, 0], sizes = [8, 16], strides = [1, 1]} : vector<8x32xf32> to vector<8x16xf32>
    %100 = vector.extract_strided_slice %91 {offsets = [0, 0], sizes = [8, 16], strides = [1, 1]} : vector<8x32xf32> to vector<8x16xf32>
    %cst_65 = arith.constant dense<0.000000e+00> : vector<8x8xf32>
    %101 = tpu.matmul %98, %99, %cst_65 {dimension_numbers = #tpu.dot_dimension_numbers<[1], [1], [0], [0], [0, 0, 1, 0], [], []>} : vector<8x16xf32>, vector<8x16xf32>, vector<8x8xf32> -> vector<8x8xf32>
    %cst_66 = arith.constant 2.500000e-01 : f32
    %102 = vector.broadcast %cst_66 : f32 to vector<8x8xf32>
    %103 = arith.mulf %101, %102 : vector<8x8xf32>
    %104 = arith.addf %103, %97 : vector<8x8xf32>
    %cst_67 = arith.constant dense<0xFF800000> : vector<8xf32>
    %105 = vector.multi_reduction <maximumf>, %104, %cst_67 [1] : vector<8x8xf32> to vector<8xf32>
    %106 = vector.shape_cast %105 : vector<8xf32> to vector<8x1xf32>
    %107 = vector.broadcast %106 : vector<8x1xf32> to vector<8x8xf32>
    %108 = arith.subf %104, %107 : vector<8x8xf32>
    %109 = math.exp %108 : vector<8x8xf32>
    %cst_68 = arith.constant dense<0.000000e+00> : vector<8xf32>
    %110 = vector.multi_reduction <add>, %109, %cst_68 [1] : vector<8x8xf32> to vector<8xf32>
    %111 = vector.shape_cast %110 : vector<8xf32> to vector<8x1xf32>
    %112 = tpu.reciprocal %111 {approx = true} : vector<8x1xf32> -> vector<8x1xf32>
    %113 = vector.broadcast %112 : vector<8x1xf32> to vector<8x8xf32>
    %114 = arith.mulf %109, %113 : vector<8x8xf32>
    %cst_69 = arith.constant dense<0.000000e+00> : vector<8x16xf32>
    %115 = tpu.matmul %114, %100, %cst_69 {dimension_numbers = #tpu.dot_dimension_numbers<[1], [0], [0], [1], [0, 0, 1, 1], [], []>} : vector<8x8xf32>, vector<8x16xf32>, vector<8x16xf32> -> vector<8x16xf32>
    %116 = vector.extract_strided_slice %89 {offsets = [0, 16], sizes = [8, 16], strides = [1, 1]} : vector<8x32xf32> to vector<8x16xf32>
    %117 = vector.extract_strided_slice %90 {offsets = [0, 16], sizes = [8, 16], strides = [1, 1]} : vector<8x32xf32> to vector<8x16xf32>
    %118 = vector.extract_strided_slice %91 {offsets = [0, 16], sizes = [8, 16], strides = [1, 1]} : vector<8x32xf32> to vector<8x16xf32>
    %cst_70 = arith.constant dense<0.000000e+00> : vector<8x8xf32>
    %119 = tpu.matmul %116, %117, %cst_70 {dimension_numbers = #tpu.dot_dimension_numbers<[1], [1], [0], [0], [0, 0, 1, 0], [], []>} : vector<8x16xf32>, vector<8x16xf32>, vector<8x8xf32> -> vector<8x8xf32>
    %cst_71 = arith.constant 2.500000e-01 : f32
    %120 = vector.broadcast %cst_71 : f32 to vector<8x8xf32>
    %121 = arith.mulf %119, %120 : vector<8x8xf32>
    %122 = arith.addf %121, %97 : vector<8x8xf32>
    %cst_72 = arith.constant dense<0xFF800000> : vector<8xf32>
    %123 = vector.multi_reduction <maximumf>, %122, %cst_72 [1] : vector<8x8xf32> to vector<8xf32>
    %124 = vector.shape_cast %123 : vector<8xf32> to vector<8x1xf32>
    %125 = vector.broadcast %124 : vector<8x1xf32> to vector<8x8xf32>
    %126 = arith.subf %122, %125 : vector<8x8xf32>
    %127 = math.exp %126 : vector<8x8xf32>
    %cst_73 = arith.constant dense<0.000000e+00> : vector<8xf32>
    %128 = vector.multi_reduction <add>, %127, %cst_73 [1] : vector<8x8xf32> to vector<8xf32>
    %129 = vector.shape_cast %128 : vector<8xf32> to vector<8x1xf32>
    %130 = tpu.reciprocal %129 {approx = true} : vector<8x1xf32> -> vector<8x1xf32>
    %131 = vector.broadcast %130 : vector<8x1xf32> to vector<8x8xf32>
    %132 = arith.mulf %127, %131 : vector<8x8xf32>
    %cst_74 = arith.constant dense<0.000000e+00> : vector<8x16xf32>
    %133 = tpu.matmul %132, %118, %cst_74 {dimension_numbers = #tpu.dot_dimension_numbers<[1], [0], [0], [1], [0, 0, 1, 1], [], []>} : vector<8x8xf32>, vector<8x16xf32>, vector<8x16xf32> -> vector<8x16xf32>
    %134 = tpu.concatenate %115, %133 in 1 : vector<8x16xf32>, vector<8x16xf32> -> vector<8x32xf32>
    %135 = tpu.concatenate %88, %134 in 0 : vector<8x32xf32>, vector<8x32xf32> -> vector<16x32xf32>
    %cst_75 = arith.constant dense<0.000000e+00> : vector<16x32xf32>
    %136 = tpu.matmul %135, %28, %cst_75 {dimension_numbers = #tpu.dot_dimension_numbers<[1], [0], [0], [1], [0, 0, 1, 1], [], []>} : vector<16x32xf32>, vector<32x32xf32>, vector<16x32xf32> -> vector<16x32xf32>
    %137 = arith.addf %37, %136 : vector<16x32xf32>
    %cst_76 = arith.constant dense<0.000000e+00> : vector<16xf32>
    %138 = vector.multi_reduction <add>, %137, %cst_76 [1] : vector<16x32xf32> to vector<16xf32>
    %139 = vector.shape_cast %138 : vector<16xf32> to vector<16x1xf32>
    %cst_77 = arith.constant 3.200000e+01 : f32
    %140 = vector.broadcast %cst_77 : f32 to vector<16x1xf32>
    %141 = arith.divf %139, %140 : vector<16x1xf32>
    %142 = vector.broadcast %141 : vector<16x1xf32> to vector<16x32xf32>
    %143 = arith.subf %137, %142 : vector<16x32xf32>
    %144 = arith.mulf %143, %143 : vector<16x32xf32>
    %cst_78 = arith.constant dense<0.000000e+00> : vector<16xf32>
    %145 = vector.multi_reduction <add>, %144, %cst_78 [1] : vector<16x32xf32> to vector<16xf32>
    %146 = vector.shape_cast %145 : vector<16xf32> to vector<16x1xf32>
    %cst_79 = arith.constant 3.200000e+01 : f32
    %147 = vector.broadcast %cst_79 : f32 to vector<16x1xf32>
    %148 = arith.divf %146, %147 : vector<16x1xf32>
    %149 = vector.broadcast %141 : vector<16x1xf32> to vector<16x32xf32>
    %150 = arith.subf %137, %149 : vector<16x32xf32>
    %cst_80 = arith.constant 9.99999974E-6 : f32
    %151 = vector.broadcast %cst_80 : f32 to vector<16x1xf32>
    %152 = arith.addf %148, %151 : vector<16x1xf32>
    %153 = math.rsqrt %152 : vector<16x1xf32>
    %154 = vector.broadcast %153 : vector<16x1xf32> to vector<16x32xf32>
    %155 = arith.mulf %150, %154 : vector<16x32xf32>
    %156 = vector.broadcast %29 : vector<1x32xf32> to vector<16x32xf32>
    %157 = arith.mulf %155, %156 : vector<16x32xf32>
    %158 = vector.broadcast %30 : vector<1x32xf32> to vector<16x32xf32>
    %159 = arith.addf %157, %158 : vector<16x32xf32>
    %cst_81 = arith.constant dense<0.000000e+00> : vector<16x64xf32>
    %160 = tpu.matmul %159, %31, %cst_81 {dimension_numbers = #tpu.dot_dimension_numbers<[1], [0], [0], [1], [0, 0, 1, 1], [], []>} : vector<16x32xf32>, vector<32x64xf32>, vector<16x64xf32> -> vector<16x64xf32>
    %161 = vector.broadcast %32 : vector<1x64xf32> to vector<16x64xf32>
    %162 = arith.addf %160, %161 : vector<16x64xf32>
    %cst_82 = arith.constant 0.000000e+00 : f32
    %163 = vector.broadcast %cst_82 : f32 to vector<16x64xf32>
    %164 = arith.maximumf %162, %163 : vector<16x64xf32>
    %cst_83 = arith.constant dense<0.000000e+00> : vector<16x32xf32>
    %165 = tpu.matmul %164, %33, %cst_83 {dimension_numbers = #tpu.dot_dimension_numbers<[1], [0], [0], [1], [0, 0, 1, 1], [], []>} : vector<16x64xf32>, vector<64x32xf32>, vector<16x32xf32> -> vector<16x32xf32>
    %166 = vector.broadcast %34 : vector<1x32xf32> to vector<16x32xf32>
    %167 = arith.addf %165, %166 : vector<16x32xf32>
    %168 = arith.addf %159, %167 : vector<16x32xf32>
    %cst_84 = arith.constant dense<0.000000e+00> : vector<16xf32>
    %169 = vector.multi_reduction <add>, %168, %cst_84 [1] : vector<16x32xf32> to vector<16xf32>
    %170 = vector.shape_cast %169 : vector<16xf32> to vector<16x1xf32>
    %cst_85 = arith.constant 3.200000e+01 : f32
    %171 = vector.broadcast %cst_85 : f32 to vector<16x1xf32>
    %172 = arith.divf %170, %171 : vector<16x1xf32>
    %173 = vector.broadcast %172 : vector<16x1xf32> to vector<16x32xf32>
    %174 = arith.subf %168, %173 : vector<16x32xf32>
    %175 = arith.mulf %174, %174 : vector<16x32xf32>
    %cst_86 = arith.constant dense<0.000000e+00> : vector<16xf32>
    %176 = vector.multi_reduction <add>, %175, %cst_86 [1] : vector<16x32xf32> to vector<16xf32>
    %177 = vector.shape_cast %176 : vector<16xf32> to vector<16x1xf32>
    %cst_87 = arith.constant 3.200000e+01 : f32
    %178 = vector.broadcast %cst_87 : f32 to vector<16x1xf32>
    %179 = arith.divf %177, %178 : vector<16x1xf32>
    %180 = vector.broadcast %172 : vector<16x1xf32> to vector<16x32xf32>
    %181 = arith.subf %168, %180 : vector<16x32xf32>
    %cst_88 = arith.constant 9.99999974E-6 : f32
    %182 = vector.broadcast %cst_88 : f32 to vector<16x1xf32>
    %183 = arith.addf %179, %182 : vector<16x1xf32>
    %184 = math.rsqrt %183 : vector<16x1xf32>
    %185 = vector.broadcast %184 : vector<16x1xf32> to vector<16x32xf32>
    %186 = arith.mulf %181, %185 : vector<16x32xf32>
    %187 = vector.broadcast %35 : vector<1x32xf32> to vector<16x32xf32>
    %188 = arith.mulf %186, %187 : vector<16x32xf32>
    %189 = vector.broadcast %36 : vector<1x32xf32> to vector<16x32xf32>
    %190 = arith.addf %188, %189 : vector<16x32xf32>
    %191 = vector.shape_cast %190 : vector<16x32xf32> to vector<2x8x32xf32>
    %c0_89 = arith.constant 0 : index
    %c0_90 = arith.constant 0 : index
    %c0_91 = arith.constant 0 : index
    %192 = vector.load %arg24[%c0_89, %c0_90, %c0_91] : memref<2x8x32xf32, #tpu.memory_space<vmem>>, vector<2x8x32xf32>
    tpu.vector_store %arg24[%c0_89, %c0_90, %c0_91], %191 {strides = array<i32>} : memref<2x8x32xf32, #tpu.memory_space<vmem>>, vector<2x8x32xf32>,
    %193 = vector.shape_cast %191 : vector<2x8x32xf32> to vector<16x32xf32>
    %cst_92 = arith.constant dense<0.000000e+00> : vector<16x32xf32>
    %194 = tpu.matmul %193, %4, %cst_92 {dimension_numbers = #tpu.dot_dimension_numbers<[1], [0], [0], [1], [0, 0, 1, 1], [], []>} : vector<16x32xf32>, vector<32x32xf32>, vector<16x32xf32> -> vector<16x32xf32>
    %195 = vector.broadcast %5 : vector<1x32xf32> to vector<16x32xf32>
    %196 = arith.addf %194, %195 : vector<16x32xf32>
    %cst_93 = arith.constant 0.000000e+00 : f32
    %197 = vector.broadcast %cst_93 : f32 to vector<16x32xf32>
    %198 = arith.maximumf %196, %197 : vector<16x32xf32>
    %cst_94 = arith.constant dense<0.000000e+00> : vector<16x1xf32>
    %199 = tpu.matmul %198, %6, %cst_94 {dimension_numbers = #tpu.dot_dimension_numbers<[1], [0], [0], [1], [0, 0, 1, 1], [], []>} : vector<16x32xf32>, vector<32x1xf32>, vector<16x1xf32> -> vector<16x1xf32>
    %200 = vector.broadcast %7 : vector<1x1xf32> to vector<16x1xf32>
    %201 = arith.addf %199, %200 : vector<16x1xf32>
    %202 = tpu.iota {dimensions = array<i32: 0>} : vector<8x1xi32>
    %c0_95 = arith.constant 0 : index
    %203 = memref.load %arg1[%c0_95] : memref<2xi32, #tpu.memory_space<smem>>
    %204 = vector.broadcast %203 : i32 to vector<8x1xi32>
    %205 = arith.cmpi slt, %202, %204 : vector<8x1xi32>
    %206 = arith.extui %205 : vector<8x1xi1> to vector<8x1xi32>
    %207 = arith.sitofp %206 : vector<8x1xi32> to vector<8x1xf32>
    %208 = vector.extract_strided_slice %201 {offsets = [0, 0], sizes = [8, 1], strides = [1, 1]} : vector<16x1xf32> to vector<8x1xf32>
    %209 = arith.mulf %208, %207 : vector<8x1xf32>
    %cst_96 = arith.constant dense<0.000000e+00> : vector<1xf32>
    %210 = vector.multi_reduction <add>, %209, %cst_96 [0] : vector<8x1xf32> to vector<1xf32>
    %211 = vector.shape_cast %210 : vector<1xf32> to vector<1x1xf32>
    %c1_97 = arith.constant 1 : index
    %212 = memref.load %arg1[%c1_97] : memref<2xi32, #tpu.memory_space<smem>>
    %213 = vector.broadcast %212 : i32 to vector<8x1xi32>
    %214 = arith.cmpi slt, %202, %213 : vector<8x1xi32>
    %215 = arith.extui %214 : vector<8x1xi1> to vector<8x1xi32>
    %216 = arith.sitofp %215 : vector<8x1xi32> to vector<8x1xf32>
    %217 = vector.extract_strided_slice %201 {offsets = [8, 0], sizes = [8, 1], strides = [1, 1]} : vector<16x1xf32> to vector<8x1xf32>
    %218 = arith.mulf %217, %216 : vector<8x1xf32>
    %cst_98 = arith.constant dense<0.000000e+00> : vector<1xf32>
    %219 = vector.multi_reduction <add>, %218, %cst_98 [0] : vector<8x1xf32> to vector<1xf32>
    %220 = vector.shape_cast %219 : vector<1xf32> to vector<1x1xf32>
    %221 = tpu.concatenate %211, %220 in 0 : vector<1x1xf32>, vector<1x1xf32> -> vector<2x1xf32>
    %c0_99 = arith.constant 0 : index
    %c0_100 = arith.constant 0 : index
    %222 = vector.load %arg25[%c0_99, %c0_100] : memref<2x1xf32, #tpu.memory_space<vmem>>, vector<2x1xf32>
    tpu.vector_store %arg25[%c0_99, %c0_100], %221 {strides = array<i32>} : memref<2x1xf32, #tpu.memory_space<vmem>>, vector<2x1xf32>,
    return
  }
  func.func @transform_0(%arg0: i32) -> i32 {
    %c0_i32 = arith.constant 0 : i32
    %c0_i32_0 = arith.constant 0 : i32
    return %c0_i32 : i32
  }
  func.func @transform_1(%arg0: i32) -> (i32, i32, i32) {
    %c0_i32 = arith.constant 0 : i32
    %c0_i32_0 = arith.constant 0 : i32
    %c0_i32_1 = arith.constant 0 : i32
    %c0_i32_2 = arith.constant 0 : i32
    return %c0_i32, %c0_i32_0, %c0_i32_1 : i32, i32, i32
  }
  func.func @transform_2(%arg0: i32) -> (i32, i32) {
    %c0_i32 = arith.constant 0 : i32
    %c0_i32_0 = arith.constant 0 : i32
    %c0_i32_1 = arith.constant 0 : i32
    return %c0_i32, %c0_i32_0 : i32, i32
  }
  func.func @transform_3(%arg0: i32) -> (i32, i32) {
    %c0_i32 = arith.constant 0 : i32
    %c0_i32_0 = arith.constant 0 : i32
    %c0_i32_1 = arith.constant 0 : i32
    return %c0_i32, %c0_i32_0 : i32, i32
  }
  func.func @transform_4(%arg0: i32) -> (i32, i32) {
    %c0_i32 = arith.constant 0 : i32
    %c0_i32_0 = arith.constant 0 : i32
    %c0_i32_1 = arith.constant 0 : i32
    return %c0_i32, %c0_i32_0 : i32, i32
  }
  func.func @transform_5(%arg0: i32) -> (i32, i32) {
    %c0_i32 = arith.constant 0 : i32
    %c0_i32_0 = arith.constant 0 : i32
    %c0_i32_1 = arith.constant 0 : i32
    return %c0_i32, %c0_i32_0 : i32, i32
  }
  func.func @transform_6(%arg0: i32) -> (i32, i32) {
    %c0_i32 = arith.constant 0 : i32
    %c0_i32_0 = arith.constant 0 : i32
    %c0_i32_1 = arith.constant 0 : i32
    return %c0_i32, %c0_i32_0 : i32, i32
  }
  func.func @transform_7(%arg0: i32) -> (i32, i32) {
    %c0_i32 = arith.constant 0 : i32
    %c0_i32_0 = arith.constant 0 : i32
    %c0_i32_1 = arith.constant 0 : i32
    return %c0_i32, %c0_i32_0 : i32, i32
  }
  func.func @transform_8(%arg0: i32) -> (i32, i32) {
    %c0_i32 = arith.constant 0 : i32
    %c0_i32_0 = arith.constant 0 : i32
    %c0_i32_1 = arith.constant 0 : i32
    return %c0_i32, %c0_i32_0 : i32, i32
  }
  func.func @transform_9(%arg0: i32) -> (i32, i32) {
    %c0_i32 = arith.constant 0 : i32
    %c0_i32_0 = arith.constant 0 : i32
    %c0_i32_1 = arith.constant 0 : i32
    return %c0_i32, %c0_i32_0 : i32, i32
  }
  func.func @transform_10(%arg0: i32) -> (i32, i32) {
    %c0_i32 = arith.constant 0 : i32
    %c0_i32_0 = arith.constant 0 : i32
    %c0_i32_1 = arith.constant 0 : i32
    return %c0_i32, %c0_i32_0 : i32, i32
  }
  func.func @transform_11(%arg0: i32) -> (i32, i32) {
    %c0_i32 = arith.constant 0 : i32
    %c0_i32_0 = arith.constant 0 : i32
    %c0_i32_1 = arith.constant 0 : i32
    return %c0_i32, %c0_i32_0 : i32, i32
  }
  func.func @transform_12(%arg0: i32) -> (i32, i32) {
    %c0_i32 = arith.constant 0 : i32
    %c0_i32_0 = arith.constant 0 : i32
    %c0_i32_1 = arith.constant 0 : i32
    return %c0_i32, %c0_i32_0 : i32, i32
  }
  func.func @transform_13(%arg0: i32) -> (i32, i32) {
    %c0_i32 = arith.constant 0 : i32
    %c0_i32_0 = arith.constant 0 : i32
    %c0_i32_1 = arith.constant 0 : i32
    return %c0_i32, %c0_i32_0 : i32, i32
  }
  func.func @transform_14(%arg0: i32) -> (i32, i32) {
    %c0_i32 = arith.constant 0 : i32
    %c0_i32_0 = arith.constant 0 : i32
    %c0_i32_1 = arith.constant 0 : i32
    return %c0_i32, %c0_i32_0 : i32, i32
  }
  func.func @transform_15(%arg0: i32) -> (i32, i32) {
    %c0_i32 = arith.constant 0 : i32
    %c0_i32_0 = arith.constant 0 : i32
    %c0_i32_1 = arith.constant 0 : i32
    return %c0_i32, %c0_i32_0 : i32, i32
  }
  func.func @transform_16(%arg0: i32) -> (i32, i32) {
    %c0_i32 = arith.constant 0 : i32
    %c0_i32_0 = arith.constant 0 : i32
    %c0_i32_1 = arith.constant 0 : i32
    return %c0_i32, %c0_i32_0 : i32, i32
  }
  func.func @transform_17(%arg0: i32) -> (i32, i32) {
    %c0_i32 = arith.constant 0 : i32
    %c0_i32_0 = arith.constant 0 : i32
    %c0_i32_1 = arith.constant 0 : i32
    return %c0_i32, %c0_i32_0 : i32, i32
  }
  func.func @transform_18(%arg0: i32) -> (i32, i32) {
    %c0_i32 = arith.constant 0 : i32
    %c0_i32_0 = arith.constant 0 : i32
    %c0_i32_1 = arith.constant 0 : i32
    return %c0_i32, %c0_i32_0 : i32, i32
  }
  func.func @transform_19(%arg0: i32) -> (i32, i32) {
    %c0_i32 = arith.constant 0 : i32
    %c0_i32_0 = arith.constant 0 : i32
    %c0_i32_1 = arith.constant 0 : i32
    return %c0_i32, %c0_i32_0 : i32, i32
  }
  func.func @transform_20(%arg0: i32) -> (i32, i32) {
    %c0_i32 = arith.constant 0 : i32
    %c0_i32_0 = arith.constant 0 : i32
    %c0_i32_1 = arith.constant 0 : i32
    return %c0_i32, %c0_i32_0 : i32, i32
  }
  func.func @transform_21(%arg0: i32) -> (i32, i32) {
    %c0_i32 = arith.constant 0 : i32
    %c0_i32_0 = arith.constant 0 : i32
    %c0_i32_1 = arith.constant 0 : i32
    return %c0_i32, %c0_i32_0 : i32, i32
  }
  func.func @transform_22(%arg0: i32) -> (i32, i32) {
    %c0_i32 = arith.constant 0 : i32
    %c0_i32_0 = arith.constant 0 : i32
    %c0_i32_1 = arith.constant 0 : i32
    return %c0_i32, %c0_i32_0 : i32, i32
  }
  func.func @transform_23(%arg0: i32) -> (i32, i32, i32) {
    %c0_i32 = arith.constant 0 : i32
    %c0_i32_0 = arith.constant 0 : i32
    %c0_i32_1 = arith.constant 0 : i32
    %c0_i32_2 = arith.constant 0 : i32
    return %c0_i32, %c0_i32_0, %c0_i32_1 : i32, i32, i32
  }
  func.func @transform_24(%arg0: i32) -> (i32, i32) {
    %c0_i32 = arith.constant 0 : i32
    %c0_i32_0 = arith.constant 0 : i32
    %c0_i32_1 = arith.constant 0 : i32
    return %c0_i32, %c0_i32_0 : i32, i32
  }
}

</mosaic_0001>

<bundles_post_ra>
// kernel: tpu_custom_call.1
= control target key start
LH: loop header
LB: loop body
LE: loop exit
PB: predicated region body
PF: predicated region fallthrough
CT: control target
= control target key end

     0   :  { %s3215_s0 = inlined_call_operand.vmem [shape: s32[2], index: 0, kind: input, shape index: {}]   ;;  %s3216_s1 = inlined_call_operand.hbm [shape: f32[2,8,32], index: 1, kind: input, shape index: {}]   ;;  %s3217_s2 = inlined_call_operand.hbm [shape: f32[8,32], index: 2, kind: input, shape index: {}]   ;;  %s3218_s3 = inlined_call_operand.vmem [shape: f32[32,32], index: 3, kind: input, shape index: {}]   ;;  %s3219_s4 = inlined_call_operand.hbm [shape: f32[1,32], index: 4, kind: input, shape index: {}]   ;;  %s3220_s5 = inlined_call_operand.vmem [shape: f32[32,32], index: 5, kind: input, shape index: {}]   ;;  %s3221_s6 = inlined_call_operand.hbm [shape: f32[1,32], index: 6, kind: input, shape index: {}]   ;;  %s3222_s7 = inlined_call_operand.vmem [shape: f32[32,32], index: 7, kind: input, shape index: {}]   ;;  %s3223_s8 = inlined_call_operand.vmem [shape: f32[32,32], index: 8, kind: input, shape index: {}]   ;;  %s3224_s9 = inlined_call_operand.hbm [shape: f32[32,32], index: 9, kind: input, shape index: {}]   ;;  %s3225_s10 = inlined_call_operand.hbm [shape: f32[32,32], index: 10, kind: input, shape index: {}]   ;;  %s3226_s11 = inlined_call_operand.hbm [shape: f32[1,32], index: 11, kind: input, shape index: {}]   ;;  %s3227_s12 = inlined_call_operand.hbm [shape: f32[1,32], index: 12, kind: input, shape index: {}]   ;;  %s3228_s13 = inlined_call_operand.hbm [shape: f32[32,64], index: 13, kind: input, shape index: {}]   ;;  %s3229_s14 = inlined_call_operand.hbm [shape: f32[1,64], index: 14, kind: input, shape index: {}]   ;;  %s3230_s15 = inlined_call_operand.vmem [shape: f32[64,32], index: 15, kind: input, shape index: {}]   ;;  %s3231_s16 = inlined_call_operand.hbm [shape: f32[1,32], index: 16, kind: input, shape index: {}]   ;;  %s3232_s17 = inlined_call_operand.vmem [shape: f32[1,32], index: 17, kind: input, shape index: {}]   ;;  %s3233_s18 = inlined_call_operand.vmem [shape: f32[1,32], index: 18, kind: input, shape index: {}]   ;;  %s3234_s19 = inlined_call_operand.vmem [shape: f32[32,32], index: 19, kind: input, shape index: {}]   ;;  %s3235_s20 = inlined_call_operand.vmem [shape: f32[1,32], index: 20, kind: input, shape index: {}]   ;;  %s3236_s21 = inlined_call_operand.vmem [shape: f32[32,1], index: 21, kind: input, shape index: {}]   ;;  %s3237_s22 = inlined_call_operand.<no memory space> [shape: f32[1,1], index: 22, kind: input, shape index: {}]   ;;  %s3238_s23 = inlined_call_operand.hbm [shape: f32[2,8,32], index: 23, kind: output, shape index: {0}]   ;;  %s3239_s24 = inlined_call_operand.vmem [shape: f32[2,1], index: 24, kind: output, shape index: {1}]  }
   0x1   :  { %3250 = sst [smem:[#allocation32_spill]] %s3215_s0  ;;  %v30_v0 = vstv %s3237_s22 }
   0x2   :  { %3251 = sst [smem:[#allocation33_spill]] %s3216_s1  ;;  %31 = vst [vmem:[#allocation2] sm:$0x1] %v30_v0 }
   0x3   :  { %3252 = sst [smem:[#allocation34_spill]] %s3217_s2 }
   0x4   :  { %3253 = sst [smem:[#allocation35_spill]] %s3218_s3 }
   0x5   :  { %3254 = sst [smem:[#allocation36_spill]] %s3219_s4 }
   0x6   :  { %3255 = sst [smem:[#allocation37_spill]] %s3220_s5 }
   0x7   :  { %3256 = sst [smem:[#allocation38_spill]] %s3221_s6 }
   0x8   :  { %3257 = sst [smem:[#allocation39_spill]] %s3222_s7 }
   0x9   :  { %3258 = sst [smem:[#allocation40_spill]] %s3223_s8 }
   0xa   :  { %32 = vsyncpa [#allocation6], 0 }
   0xb   :  { %33 = vsyncpa [#allocation4], 0 }
   0xc   :  { %34 = vsyncpa [#allocation9], 0 }
   0xd   :  { %35 = vsyncpa [#allocation12], 0 }
   0xe   :  { %36 = vsyncpa [#allocation15], 0 }
   0xf   :  { %37 = vsyncpa [#allocation18], 0 }
  0x10   :  { %38 = vsyncpa [#allocation21], 0 }
  0x11   :  { %39 = vsyncpa [#allocation5], 0  ;;  %s2671_s27 = smov [#allocation8]   ;;  %s2672_s6 = smov [#allocation11]  }
  0x12   :  { %s68_s28 = sshll.u32 %s2671_s27, 4  ;;  %s92_s2 = sshll.u32 %s2672_s6, 4  ;;  %s69_s28 = int_to_ptr.vmem [resolvable:$true] %s68_s28  ;;  %s93_s2 = int_to_ptr.vmem [resolvable:$true] %s92_s2 }
  0x13   :  { %s3259_s7 = sld [smem:[#allocation34_spill]] }
  0x19   :  { %s2379_s30 = scalar_lea.hbm %s3259_s7, 128 }
  0x1a   :  { %p2380_p0 = scmp.ne.s32.totalorder %s3259_s7, %s2379_s30  ;;  %p2383_p1 = scmp.lt.u32.totalorder %s2379_s30, %s3259_s7 }
  0x1c   :  { %p2385_p2 = pnand %p2383_p1, %p2380_p0 }
  0x1e   :  { %2388 = shalt.err (!%p2385_p2)
}
  0x1f   :  { %s2389_s4 = scalar_lea.vmem %s69_s28, 128  ;;  %p2394_p4 = scmp.lt.s32.totalorder %s69_s28, %s69_s28 }
  0x20   :  { %p2390_p3 = scmp.ne.s32.totalorder %s69_s28, %s2389_s4  ;;  %p2395_p5 = scmp.lt.s32.totalorder %s2389_s4, %s2389_s4 }
  0x22   :  { %p2396_p6 = por %p2395_p5, %p2394_p4 }
  0x24   :  { %p2397_p7 = pnand %p2396_p6, %p2390_p3 }
  0x26   :  { %2400 = shalt.err (!%p2397_p7)
}
  0x27   :  { %71 = dma.hbm_to_vmem [thread:$0]  %s3259_s7, 128, %s69_s28, [#allocation9]  }
  0x28   :  { %s3260_s6 = sld [smem:[#allocation38_spill]] }
  0x2e   :  { %s2401_s29 = scalar_lea.hbm %s3260_s6, 16 }
  0x2f   :  { %p2402_p8 = scmp.ne.s32.totalorder %s3260_s6, %s2401_s29  ;;  %p2405_p9 = scmp.lt.u32.totalorder %s2401_s29, %s3260_s6 }
  0x31   :  { %p2407_p10 = pnand %p2405_p9, %p2402_p8 }
  0x33   :  { %2410 = shalt.err (!%p2407_p10)
}
  0x34   :  { %s2411_s25 = scalar_lea.vmem %s93_s2, 16  ;;  %s2415_s8 = scalar_lea.vmem %s93_s2, 32 }
  0x35   :  { %p2412_p11 = scmp.ne.s32.totalorder %s93_s2, %s2411_s25  ;;  %p2416_p12 = scmp.lt.s32.totalorder %s93_s2, %s93_s2 }
  0x36   :  { %p2417_p13 = scmp.lt.s32.totalorder %s2415_s8, %s2411_s25 }
  0x38   :  { %p2418_p0 = por %p2417_p13, %p2416_p12 }
  0x3a   :  { %p2419_p1 = pnand %p2418_p0, %p2412_p11 }
  0x3c   :  { %2422 = shalt.err (!%p2419_p1)
}
  0x3d   :  { %95 = dma.hbm_to_vmem [thread:$0]  %s3260_s6, 16, %s93_s2, [#allocation12]  }
  0x3e   :  { %s2673_s4 = smov [#allocation14]   ;;  %s2674_s5 = smov [#allocation17]  }
  0x3f   :  { %s117_s1 = sshll.u32 %s2673_s4, 4  ;;  %s140_s26 = sshll.u32 %s2674_s5, 4  ;;  %s118_s1 = int_to_ptr.vmem [resolvable:$true] %s117_s1  ;;  %s2843_s26 = int_to_ptr.vmem [resolvable:$true] %s140_s26 }
  0x40   :  { %s2423_s0 = scalar_lea.hbm %s3225_s10, 512 }
  0x41   :  { %p2424_p2 = scmp.ne.s32.totalorder %s3225_s10, %s2423_s0  ;;  %p2427_p3 = scmp.lt.u32.totalorder %s2423_s0, %s3225_s10 }
  0x43   :  { %p2429_p4 = pnand %p2427_p3, %p2424_p2 }
  0x45   :  { %2432 = shalt.err (!%p2429_p4)
}
  0x46   :  { %s2433_s2 = scalar_lea.vmem %s118_s1, 512  ;;  %p2438_p6 = scmp.lt.s32.totalorder %s118_s1, %s118_s1 }
  0x47   :  { %p2434_p5 = scmp.ne.s32.totalorder %s118_s1, %s2433_s2  ;;  %p2439_p7 = scmp.lt.s32.totalorder %s2433_s2, %s2433_s2 }
  0x49   :  { %p2440_p8 = por %p2439_p7, %p2438_p6 }
  0x4b   :  { %p2441_p9 = pnand %p2440_p8, %p2434_p5 }
  0x4d   :  { %2444 = shalt.err (!%p2441_p9)
}
  0x4e   :  { %s3248_s6 = smov 128   ;;  %s2676_s8 = smov 8  }
  0x4f   :  { %123 = dma.hbm_to_vmem [thread:$0]  %s3225_s10, 512, %s118_s1, [#allocation15], %s3248_s6, %s3248_s6, %s2676_s8  }
  0x50   :  { %s2445_s27 = scalar_lea.hbm %s3227_s12, 16 }
  0x51   :  { %p2446_p10 = scmp.ne.s32.totalorder %s3227_s12, %s2445_s27  ;;  %p2449_p11 = scmp.lt.u32.totalorder %s2445_s27, %s3227_s12 }
  0x53   :  { %p2451_p12 = pnand %p2449_p11, %p2446_p10 }
  0x55   :  { %2454 = shalt.err (!%p2451_p12)
}
  0x56   :  { %s2455_s3 = scalar_lea.vmem %s2843_s26, 16  ;;  %s2459_s10 = scalar_lea.vmem %s2843_s26, 32 }
  0x57   :  { %p2456_p13 = scmp.ne.s32.totalorder %s2843_s26, %s2455_s3  ;;  %p2460_p0 = scmp.lt.s32.totalorder %s2843_s26, %s2843_s26 }
  0x58   :  { %p2461_p1 = scmp.lt.s32.totalorder %s2459_s10, %s2455_s3 }
  0x5a   :  { %p2462_p2 = por %p2461_p1, %p2460_p0 }
  0x5c   :  { %p2463_p3 = pnand %p2462_p2, %p2456_p13 }
  0x5e   :  { %2466 = shalt.err (!%p2463_p3)
}
  0x5f   :  { %143 = dma.hbm_to_vmem [thread:$0]  %s3227_s12, 16, %s2843_s26, [#allocation18]  }
  0x60   :  { %s3261_s7 = sld [smem:[#allocation32_spill]]  ;;  %s2677_s5 = smov [#allocation20]  }
  0x61   :  { %s162_s27 = sshll.u32 %s2677_s5, 4  ;;  %s2467_s22 = scalar_lea.hbm %s3229_s14, 16  ;;  %s163_s27 = int_to_ptr.vmem [resolvable:$true] %s162_s27 }
  0x62   :  { %p2468_p4 = scmp.ne.s32.totalorder %s3229_s14, %s2467_s22  ;;  %p2471_p5 = scmp.lt.u32.totalorder %s2467_s22, %s3229_s14 }
  0x64   :  { %p2473_p6 = pnand %p2471_p5, %p2468_p4 }
  0x66   :  { %s46_s4 = sshll.u32 %s3261_s7, 4  ;;  %s47_s4 = int_to_ptr.vmem [resolvable:$true] %s46_s4 }
  0x67   :  { %2476 = shalt.err (!%p2473_p6)
}
  0x68   :  { %s2477_s12 = scalar_lea.vmem %s163_s27, 16  ;;  %s2481_s26 = scalar_lea.vmem %s163_s27, 32 }
  0x69   :  { %p2478_p7 = scmp.ne.s32.totalorder %s163_s27, %s2477_s12  ;;  %p2482_p8 = scmp.lt.s32.totalorder %s163_s27, %s163_s27 }
  0x6a   :  { %p2483_p9 = scmp.lt.s32.totalorder %s2481_s26, %s2477_s12 }
  0x6c   :  { %p2484_p10 = por %p2483_p9, %p2482_p8 }
  0x6e   :  { %p2485_p11 = pnand %p2484_p10, %p2478_p7 }
  0x70   :  { %2488 = shalt.err (!%p2485_p11)
}
  0x71   :  { %165 = dma.hbm_to_vmem [thread:$0]  %s3229_s14, 16, %s163_s27, [#allocation21]  }
  0x72   :  { %s2489_s2 = scalar_lea.vmem %s47_s4, 16  ;;  %p2494_p13 = scmp.lt.s32.totalorder %s47_s4, %s47_s4 }
  0x73   :  { %p2490_p12 = scmp.ne.s32.totalorder %s47_s4, %s2489_s2  ;;  %p2495_p0 = scmp.lt.s32.totalorder %s2489_s2, %s2489_s2 }
  0x75   :  { %p2496_p1 = por %p2495_p0, %p2494_p13 }
  0x77   :  { %p2497_p2 = pnand %p2496_p1, %p2490_p12 }
  0x79   :  { %2500 = shalt.err (!%p2497_p2)
}
  0x7a   :  { %s2678_s6 = smov [#allocation3]   ;;  %s2679_s28 = smov [#allocation7]  }
  0x7b   :  { %49 = dma.vmem_to_smem %s47_s4, 16, %s2678_s6, [#allocation6]  }
  0x7c   :  { %s55_s7 = sshll.u32 %s2679_s28, 4  ;;  %s2680_s5 = smov [#allocation10]   ;;  %s56_s7 = int_to_ptr.vmem [resolvable:$true] %s55_s7 }
  0x7d   :  { %s80_s29 = sshll.u32 %s2680_s5, 4  ;;  %s3262_s30 = sld [smem:[#allocation33_spill]]  ;;  %s81_s29 = int_to_ptr.vmem [resolvable:$true] %s80_s29 }
  0x83   :  { %s2501_s3 = scalar_lea.hbm %s3262_s30, 256 }
  0x84   :  { %p2502_p3 = scmp.ne.s32.totalorder %s3262_s30, %s2501_s3  ;;  %p2505_p4 = scmp.lt.u32.totalorder %s2501_s3, %s3262_s30 }
  0x86   :  { %p2507_p5 = pnand %p2505_p4, %p2502_p3 }
  0x88   :  { %2510 = shalt.err (!%p2507_p5)
}
  0x89   :  { %s2511_s4 = scalar_lea.vmem %s56_s7, 256  ;;  %p2516_p7 = scmp.lt.s32.totalorder %s56_s7, %s56_s7 }
  0x8a   :  { %p2512_p6 = scmp.ne.s32.totalorder %s56_s7, %s2511_s4  ;;  %p2517_p8 = scmp.lt.s32.totalorder %s2511_s4, %s2511_s4 }
  0x8c   :  { %p2518_p9 = por %p2517_p8, %p2516_p7 }
  0x8e   :  { %p2519_p10 = pnand %p2518_p9, %p2512_p6 }
  0x90   :  { %2522 = shalt.err (!%p2519_p10)
}
  0x91   :  { %s3263_s26 = smov 128   ;;  %s3264_s28 = sld [smem:[#allocation36_spill]] }
  0x92   :  { %61 = dma.hbm_to_vmem [thread:$0]  %s3262_s30, 256, %s56_s7, [#allocation4], %s3263_s26, %s3263_s26, %s2676_s8  }
  0x97   :  { %s2523_s5 = scalar_lea.hbm %s3264_s28, 16 }
  0x98   :  { %p2524_p11 = scmp.ne.s32.totalorder %s3264_s28, %s2523_s5  ;;  %p2527_p12 = scmp.lt.u32.totalorder %s2523_s5, %s3264_s28 }
  0x9a   :  { %p2529_p13 = pnand %p2527_p12, %p2524_p11 }
  0x9c   :  { %2532 = shalt.err (!%p2529_p13)
}
  0x9d   :  { %s2533_s27 = scalar_lea.vmem %s81_s29, 16  ;;  %s2537_s10 = scalar_lea.vmem %s81_s29, 32 }
  0x9e   :  { %p2534_p0 = scmp.ne.s32.totalorder %s81_s29, %s2533_s27  ;;  %p2538_p1 = scmp.lt.s32.totalorder %s81_s29, %s81_s29 }
  0x9f   :  { %p2539_p2 = scmp.lt.s32.totalorder %s2537_s10, %s2533_s27 }
  0xa1   :  { %p2540_p3 = por %p2539_p2, %p2538_p1 }
  0xa3   :  { %p2541_p4 = pnand %p2540_p3, %p2534_p0 }
  0xa5   :  { %2544 = shalt.err (!%p2541_p4)
}
  0xa6   :  { %83 = dma.hbm_to_vmem [thread:$0]  %s3264_s28, 16, %s81_s29, [#allocation9]  }
  0xa7   :  { %s2681_s12 = smov [#allocation13]   ;;  %s2682_s1 = smov [#allocation16]  }
  0xa8   :  { %s105_s4 = sshll.u32 %s2681_s12, 4  ;;  %s130_s25 = sshll.u32 %s2682_s1, 4  ;;  %s106_s4 = int_to_ptr.vmem [resolvable:$true] %s105_s4  ;;  %s131_s25 = int_to_ptr.vmem [resolvable:$true] %s130_s25 }
  0xa9   :  { %s2545_s5 = scalar_lea.hbm %s3224_s9, 512 }
  0xaa   :  { %p2546_p5 = scmp.ne.s32.totalorder %s3224_s9, %s2545_s5  ;;  %p2549_p6 = scmp.lt.u32.totalorder %s2545_s5, %s3224_s9 }
  0xac   :  { %p2551_p7 = pnand %p2549_p6, %p2546_p5 }
  0xae   :  { %2554 = shalt.err (!%p2551_p7)
}
  0xaf   :  { %s2555_s29 = scalar_lea.vmem %s106_s4, 512  ;;  %p2560_p9 = scmp.lt.s32.totalorder %s106_s4, %s106_s4 }
  0xb0   :  { %p2556_p8 = scmp.ne.s32.totalorder %s106_s4, %s2555_s29  ;;  %p2561_p10 = scmp.lt.s32.totalorder %s2555_s29, %s2555_s29 }
  0xb2   :  { %p2562_p11 = por %p2561_p10, %p2560_p9 }
  0xb4   :  { %p2563_p12 = pnand %p2562_p11, %p2556_p8 }
  0xb6   :  { %2566 = shalt.err (!%p2563_p12)
}
  0xb7   :  { %111 = dma.hbm_to_vmem [thread:$0]  %s3224_s9, 512, %s106_s4, [#allocation12], %s3263_s26, %s3263_s26, %s2676_s8  }
  0xb8   :  { %s2567_s30 = scalar_lea.hbm %s3226_s11, 16 }
  0xb9   :  { %p2568_p13 = scmp.ne.s32.totalorder %s3226_s11, %s2567_s30  ;;  %p2571_p0 = scmp.lt.u32.totalorder %s2567_s30, %s3226_s11 }
  0xbb   :  { %p2573_p1 = pnand %p2571_p0, %p2568_p13 }
  0xbd   :  { %2576 = shalt.err (!%p2573_p1)
}
  0xbe   :  { %s2577_s5 = scalar_lea.vmem %s131_s25, 16  ;;  %s2581_s0 = scalar_lea.vmem %s131_s25, 32 }
  0xbf   :  { %p2578_p2 = scmp.ne.s32.totalorder %s131_s25, %s2577_s5  ;;  %p2582_p3 = scmp.lt.s32.totalorder %s131_s25, %s131_s25 }
  0xc0   :  { %p2583_p4 = scmp.lt.s32.totalorder %s2581_s0, %s2577_s5 }
  0xc2   :  { %p2584_p5 = por %p2583_p4, %p2582_p3 }
  0xc4   :  { %p2585_p6 = pnand %p2584_p5, %p2578_p2 }
  0xc6   :  { %2588 = shalt.err (!%p2585_p6)
}
  0xc7   :  { %133 = dma.hbm_to_vmem [thread:$0]  %s3226_s11, 16, %s131_s25, [#allocation15]  }
  0xc8   :  { %s2683_s22 = smov [#allocation19]   ;;  %s2684_s14 = smov [#allocation22]  }
  0xc9   :  { %s149_s3 = sshll.u32 %s2683_s22, 4  ;;  %s174_s29 = sshll.u32 %s2684_s14, 4  ;;  %s150_s3 = int_to_ptr.vmem [resolvable:$true] %s149_s3  ;;  %s175_s29 = int_to_ptr.vmem [resolvable:$true] %s174_s29 }
  0xca   :  { %s2589_s10 = scalar_lea.hbm %s3228_s13, 512 }
  0xcb   :  { %p2590_p7 = scmp.ne.s32.totalorder %s3228_s13, %s2589_s10  ;;  %p2593_p8 = scmp.lt.u32.totalorder %s2589_s10, %s3228_s13 }
  0xcd   :  { %p2595_p9 = pnand %p2593_p8, %p2590_p7 }
  0xcf   :  { %2598 = shalt.err (!%p2595_p9)
}
  0xd0   :  { %s2599_s11 = scalar_lea.vmem %s150_s3, 512  ;;  %p2604_p11 = scmp.lt.s32.totalorder %s150_s3, %s150_s3 }
  0xd1   :  { %p2600_p10 = scmp.ne.s32.totalorder %s150_s3, %s2599_s11  ;;  %p2605_p12 = scmp.lt.s32.totalorder %s2599_s11, %s2599_s11 }
  0xd3   :  { %p2606_p13 = por %p2605_p12, %p2604_p11 }
  0xd5   :  { %p2607_p0 = pnand %p2606_p13, %p2600_p10 }
  0xd7   :  { %2610 = shalt.err (!%p2607_p0)
}
  0xd8   :  { %155 = dma.hbm_to_vmem [thread:$0]  %s3228_s13, 512, %s150_s3, [#allocation18], %s3263_s26, %s3263_s26, %s2676_s8  }
  0xd9   :  { %s2611_s0 = scalar_lea.hbm %s3231_s16, 16 }
  0xda   :  { %p2612_p1 = scmp.ne.s32.totalorder %s3231_s16, %s2611_s0  ;;  %p2615_p2 = scmp.lt.u32.totalorder %s2611_s0, %s3231_s16 }
  0xdc   :  { %p2617_p3 = pnand %p2615_p2, %p2612_p1 }
  0xde   :  { %2620 = shalt.err (!%p2617_p3)
}
  0xdf   :  { %s2621_s28 = scalar_lea.vmem %s175_s29, 16  ;;  %s2625_s27 = scalar_lea.vmem %s175_s29, 32 }
  0xe0   :  { %p2622_p4 = scmp.ne.s32.totalorder %s175_s29, %s2621_s28  ;;  %p2626_p5 = scmp.lt.s32.totalorder %s175_s29, %s175_s29 }
  0xe1   :  { %p2627_p6 = scmp.lt.s32.totalorder %s2625_s27, %s2621_s28 }
  0xe3   :  { %p2628_p7 = por %p2627_p6, %p2626_p5 }
  0xe5   :  { %p2629_p8 = pnand %p2628_p7, %p2622_p4 }
  0xe7   :  { %2632 = shalt.err (!%p2629_p8)
}
  0xe8   :  { %177 = dma.hbm_to_vmem [thread:$0]  %s3231_s16, 16, %s175_s29, [#allocation21]  }
  0xe9   :  { %2655 = dma.done.wait [#allocation6], 16  }
  0xea   :  { %2656 = vsyncadd [#allocation6], 4294967280 }
  0xeb   :  { %2657 = dma.done.wait [#allocation4], 256  }
  0xec   :  { %2658 = vsyncadd [#allocation4], 4294967040 }
  0xed   :  { %2659 = dma.done.wait [#allocation9], 144  }
  0xee   :  { %2660 = vsyncadd [#allocation9], 4294967152 }
  0xef   :  { %2661 = dma.done.wait [#allocation12], 528  }
  0xf0   :  { %2662 = vsyncadd [#allocation12], 4294966768 }
  0xf1   :  { %2663 = dma.done.wait [#allocation15], 528  }
  0xf2   :  { %2664 = vsyncadd [#allocation15], 4294966768 }
  0xf3   :  { %2665 = dma.done.wait [#allocation18], 528  }
  0xf4   :  { %2666 = vsyncadd [#allocation18], 4294966768 }
  0xf5   :  { %2667 = dma.done.wait [#allocation21], 32  }
  0xf6   :  { %2668 = vsyncadd [#allocation21], 4294967264 }
  0xf7   :  { %226 = sfence }
  0xf8   :  { %s3265_s30 = sld [smem:[#allocation35_spill]]  ;;  %vm255_vm0 = vcmask 261120   ;;  %v247_v6 = vld [vmem:[#allocation7] sm:$0xff]  ;;  %s3266_s5 = sld [smem:[#allocation37_spill]]  ;;  %v248_v11 = vld [vmem:[#allocation7 + $0x8] sm:$0xff]  ;;  %v428_v43 = vld [vmem:[#allocation8] sm:$0xff]  ;;  %v696_v61 = vlaneseq }
  0xf9   :  { %2097 = vmatprep.mubr.msk.f32.mxu0 %vm255_vm0, %v247_v6  ;;  %v1963_v15 = vld [vmem:[#allocation10] ss:$0 sm:$0xff]  ;;  %s3267_s3 = sld [smem:[#allocation39_spill]]  ;;  %s3268_s29 = sld [smem:[#allocation40_spill]]  ;;  %v439_v34 = vld [vmem:[#allocation13] sm:$0xff]  ;;  %v440_v35 = vld [vmem:[#allocation13 + $0x8] sm:$0xff] }
  0xfa   :  { %v2279_v36 = vpack.c.bf16 %v440_v35, %v439_v34  ;;  %v1966_v37 = vld [vmem:[#allocation11] ss:$0 sm:$0xff]  ;;  %v441_v45 = vld [vmem:[#allocation13 + $0x10] sm:$0xff]  ;;  %v2685_v50 = vmov 0.0   ;;  %vm2686_vm1 = vmmov 0   ;;  %vm702_vm2 = vcmask 130048  }
  0xfb   :  { %v442_v46 = vld [vmem:[#allocation13 + $0x18] sm:$0xff]  ;;  %s2687_s22 = smov 112   ;;  %s3075_s14 = sld [smem:[#allocation3]]  ;;  %v697_v62 = vand.u32 127, %v696_v61  ;;  %vm781_vm4 = vcmask 64512   ;;  %vm1599_vm6 = vcmask 523264  }
  0xfc   :  { %v2283_v49 = vpack.c.bf16 %v442_v46, %v441_v45  ;;  %s3082_s28 = sld [smem:[#allocation3 + $0x1]]  ;;  %s2689_s27 = smov 16  }
  0xfd   :  { %s2690_s9 = smov [#allocation23]  }
  0xfe   :  { %v227_v1 = vld [vmem:[%s3265_s30] sm:$0xff]  ;;  %v228_v2 = vld [vmem:[%s3265_s30 + $0x8] sm:$0xff]  ;;  %v229_v3 = vld [vmem:[%s3265_s30 + $0x10] sm:$0xff] }
  0xff   :  { %v2247_v4 = vpack.c.bf16 %v228_v2, %v227_v1  ;;  %v230_v5 = vld [vmem:[%s3265_s30 + $0x18] sm:$0xff]  ;;  %v232_v8 = vld [vmem:[%s3266_s5] sm:$0xff]  ;;  %v233_v9 = vld [vmem:[%s3266_s5 + $0x8] sm:$0xff]  ;;  %v2688_v1 = vmov -1e+09  }
 0x100   :  { %v2251_v7 = vpack.c.bf16 %v230_v5, %v229_v3  ;;  %v2255_v10 = vpack.c.bf16 %v233_v9, %v232_v8  ;;  %v234_v12 = vld [vmem:[%s3266_s5 + $0x10] sm:$0xff]  ;;  %v235_v13 = vld [vmem:[%s3266_s5 + $0x18] sm:$0xff]  ;;  %v431_v22 = vld [vmem:[%s3267_s3] sm:$0xff] }
 0x101   :  { %2248 = vmatprep.subr.bf16.mxu0 %v2247_v4  ;;  %v2259_v14 = vpack.c.bf16 %v235_v13, %v234_v12  ;;  %v432_v23 = vld [vmem:[%s3267_s3 + $0x8] sm:$0xff]  ;;  %v435_v25 = vld [vmem:[%s3268_s29] sm:$0xff]  ;;  %v433_v28 = vld [vmem:[%s3267_s3 + $0x10] sm:$0xff]  ;;  %v699_v63 = vstv %s3075_s14 }
 0x102   :  { %2250 = vmatpush3.bf16.msra.mxu0 %v2247_v4  ;;  %2256 = vmatprep.subr.bf16.mxu1 %v2255_v10  ;;  %v2263_v24 = vpack.c.bf16 %v432_v23, %v431_v22  ;;  %v436_v26 = vld [vmem:[%s3268_s29 + $0x8] sm:$0xff]  ;;  %v434_v29 = vld [vmem:[%s3267_s3 + $0x18] sm:$0xff]  ;;  %v437_v31 = vld [vmem:[%s3268_s29 + $0x10] sm:$0xff]  ;;  %vm700_vm3 = vcmp.lt.s32.totalorder %v697_v62, %v699_v63 }
 0x103   :  { %2252 = vmatprep.subr.bf16.mxu0 %v2251_v7  ;;  %2258 = vmatpush3.bf16.msra.mxu1 %v2255_v10  ;;  %v2271_v27 = vpack.c.bf16 %v436_v26, %v435_v25  ;;  %v2267_v30 = vpack.c.bf16 %v434_v29, %v433_v28  ;;  %v438_v32 = vld [vmem:[%s3268_s29 + $0x18] sm:$0xff]  ;;  %v701_v2 = vsel %vm700_vm3, 0.0, %v2688_v1 }
 0x104   :  { %2260 = vmatprep.subr.bf16.mxu1 %v2259_v14  ;;  %v2275_v33 = vpack.c.bf16 %v438_v32, %v437_v31 }
 0x106   :  { %2254 = vmatpush3.bf16.msra.mxu0 %v2251_v7  ;;  %v1040_v7 = vstv %s3082_s28 }
 0x107   :  { %2262 = vmatpush3.bf16.msra.mxu1 %v2259_v14  ;;  %2264 = vmatprep.subr.bf16.mxu0 %v2263_v24  ;;  %vm1041_vm5 = vcmp.lt.s32.totalorder %v697_v62, %v1040_v7 }
 0x108   :  { %2272 = vmatprep.subr.bf16.mxu1 %v2271_v27  ;;  %v1042_v13 = vsel %vm1041_vm5, 0.0, %v2688_v1 }
 0x109   :  { %2098 = vmatmul.mubr.msk.f32.vlgmr.msra.gmra.mrb[0].mxu0 %vm255_vm0, %v248_v11 }
 0x10a   :  { %2266 = vmatpush3.bf16.msra.mxu0 %v2263_v24 }
 0x10b   :  { %2268 = vmatprep.subr.bf16.mxu0 %v2267_v30 }
 0x10e   :  { %2270 = vmatpush3.bf16.msra.mxu0 %v2267_v30 }
 0x10f   :  { %2280 = vmatprep.subr.bf16.mxu0 %v2279_v36 }
 0x1dc   :  { %v2099_v16 = vpop.f32.mrb[0].mxu0 }
 0x1dd   :  { %v334_v17 = vadd.f32 %v2099_v16, %v1963_v15  ;;  %v328_v18 = vpop.f32.mrb[1].mxu0 }
 0x1de   :  { %v329_v19 = vadd.f32 %v1963_v15, %v328_v18 }
 0x1df   :  { %v338_v21 = vmax.f32 %v334_v17, 0.0 }
 0x1e0   :  { %v337_v20 = vmax.f32 %v329_v19, 0.0 }
 0x1e2   :  { %2108 = vmatprep.mubr.msk.f32.mxu1 %vm255_vm0, %v337_v20 }
 0x1e3   :  { %2109 = vmatmul.mubr.msk.f32.vlgmr.msra.gmra.mrb[0].mxu1 %vm255_vm0, %v338_v21 }
 0x1e4   :  { %2274 = vmatpush3.bf16.msra.mxu1 %v2271_v27 }
 0x1e5   :  { %2276 = vmatprep.subr.bf16.mxu1 %v2275_v33 }
 0x1e8   :  { %2278 = vmatpush3.bf16.msra.mxu1 %v2275_v33 }
 0x1e9   :  { %2144 = vmatprep.subr.mxu1 %v2685_v50 }
 0x2b6   :  { %v2110_v38 = vpop.f32.mrb[0].mxu1 }
 0x2b7   :  { %v423_v39 = vadd.f32 %v2110_v38, %v1966_v37  ;;  %v417_v40 = vpop.f32.mrb[1].mxu1 }
 0x2b8   :  { %v418_v41 = vadd.f32 %v1966_v37, %v417_v40 }
 0x2b9   :  { %v427_v42 = vmax.f32 %v423_v39, 0.0 }
 0x2ba   :  { %v426_v44 = vmax.f32 %v418_v41, 0.0 }
 0x2bb   :  { %v3028_v48 = vadd.f32 %v428_v43, %v427_v42 }
 0x2bc   :  { %v3026_v47 = vadd.f32 %v428_v43, %v426_v44 }
 0x2be   :  { %2119 = vmatprep.mubr.msk.f32.mxu0 %vm255_vm0, %v3026_v47  ;;  %2130 = vmatprep.mubr.msk.f32.mxu1 %vm255_vm0, %v3026_v47 }
 0x2bf   :  { %2120 = vmatmul.mubr.msk.f32.vlgmr.msra.gmra.mrb[2].mxu0 %vm255_vm0, %v3028_v48  ;;  %2131 = vmatmul.mubr.msk.f32.vlgmr.msra.gmra.mrb[2].mxu1 %vm255_vm0, %v3028_v48 }
 0x2c0   :  { %2282 = vmatpush3.bf16.msra.mxu0 %v2279_v36  ;;  %2141 = vmatprep.mubr.msk.f32.mxu0 %vm255_vm0, %v3026_v47 }
 0x2c1   :  { %2284 = vmatprep.subr.bf16.mxu0 %v2283_v49  ;;  %2146 = vmatprep.mubr.msk.f32.mxu1 %vm2686_vm1, %v2685_v50 }
 0x2c4   :  { %2286 = vmatpush3.bf16.msra.mxu0 %v2283_v49 }
 0x2c5   :  { %2154 = vmatprep.subr.mxu0 %v2685_v50 }
 0x2c7   :  { %2142 = vmatmul.mubr.msk.f32.vlgmr.msra.gmra.mrb[4].mxu0 %vm255_vm0, %v3028_v48 }
 0x2c8   :  { %2156 = vmatprep.mubr.msk.f32.mxu0 %vm2686_vm1, %v2685_v50 }
 0x392   :  { %v2121_v51 = vpop.f32.mrb[2].mxu0  ;;  %v2132_v52 = vpop.f32.mrb[2].mxu1 }
 0x393   :  { %1207 = vrot.lane.b32.xlu1 %v2132_v52, %s2687_s22  ;;  %v537_v53 = vpop.f32.mrb[3].mxu0  ;;  %v612_v54 = vpop.f32.mrb[3].mxu1 }
 0x394   :  { %868 = vrot.lane.b32.xlu0 %v612_v54, %s2687_s22  ;;  %2145 = vmatpush3.xpose.msk.msra.mxu1 %vm702_vm2, %v612_v54 }
 0x395   :  { %2149 = vmatprep.subr.mxu1 %v2685_v50 }
 0x397   :  { %1205 = vrot.lane.b32.xlu1 %v2121_v51, %s2687_s22  ;;  %2147 = vmatmul.mubr.msk.f32.vlgmr.msra.gmra.mrb[4].mxu1 %vm702_vm2, %v537_v53 }
 0x398   :  { %866 = vrot.lane.b32.xlu0 %v537_v53, %s2687_s22  ;;  %2151 = vmatprep.mubr.msk.f32.mxu1 %vm2686_vm1, %v2685_v50 }
 0x39a   :  { %v3057_v55 = vpop.f32.mrb[4].mxu0 }
 0x39b   :  { %v3059_v56 = vpop.f32.mrb[5].mxu0 }
 0x39c   :  { %2150 = vmatpush3.msra.mxu1 %v3059_v56 }
 0x39d   :  { %2159 = vmatprep.subr.mxu1 %v2685_v50 }
 0x405   :  { %v1208_v59 = vpop.permute.xlu1 %1207 }
 0x406   :  { %v869_v57 = vpop.permute.xlu0 %868 }
 0x407   :  { %2155 = vmatpush3.xpose.msk.msra.mxu0 %vm702_vm2, %v869_v57 }
 0x408   :  { %2164 = vmatprep.subr.mxu0 %v2685_v50 }
 0x409   :  { %v1206_v60 = vpop.permute.xlu1 %1205 }
 0x40a   :  { %v867_v58 = vpop.permute.xlu0 %866 }
 0x40b   :  { %2157 = vmatmul.mubr.msk.f32.vlgmr.msra.gmra.mrb[6].mxu0 %vm702_vm2, %v867_v58 }
 0x40c   :  { %2165 = vmatpush3.xpose.msk.msra.mxu0 %vm702_vm2, %v2132_v52  ;;  %2166 = vmatprep.mubr.msk.f32.mxu0 %vm2686_vm1, %v2685_v50 }
 0x40d   :  { %2174 = vmatprep.subr.mxu0 %v2685_v50 }
 0x40f   :  { %2167 = vmatmul.mubr.msk.f32.vlgmr.msra.gmra.mrb[8].mxu0 %vm702_vm2, %v2121_v51 }
 0x410   :  { %2175 = vmatpush3.xpose.msk.msra.mxu0 %vm702_vm2, %v1208_v59  ;;  %2176 = vmatprep.mubr.msk.f32.mxu0 %vm2686_vm1, %v2685_v50 }
 0x413   :  { %2177 = vmatmul.mubr.msk.f32.vlgmr.msra.gmra.mrb[10].mxu0 %vm702_vm2, %v1206_v60 }
 0x46a   :  { %v775_v0 = vpop.f32.mrb[4].mxu1 }
 0x46b   :  { %v779_v3 = vmul.f32 0.25, %v775_v0  ;;  %v2148_v4 = vpop.f32.mrb[5].mxu1 }
 0x46c   :  { %v445_v4 = vld [vmem:[#allocation14 + $0x10] sm:$0xff] }
 0x46d   :  { %v780_v5 = vadd.f32 %v779_v3, %v701_v2 }
 0x46f   :  { %v782_v6 = vsel %vm781_vm4, %v780_v5, -inf }
 0x470   :  { %783 = vmax.xlane.f32.xlu0 %v782_v6 }
 0x4de   :  { %v940_v8 = vpop.f32.mrb[6].mxu0 }
 0x4df   :  { %v944_v9 = vmul.f32 0.25, %v940_v8  ;;  %v2158_v10 = vpop.f32.mrb[7].mxu0 }
 0x4e1   :  { %v945_v11 = vadd.f32 %v944_v9, %v701_v2  ;;  %v444_v2 = vld [vmem:[#allocation14 + $0x8] sm:$0xff] }
 0x4e2   :  { %v1115_v12 = vpop.f32.mrb[8].mxu0 }
 0x4e3   :  { %v1119_v14 = vmul.f32 0.25, %v1115_v12  ;;  %v2168_v15 = vpop.f32.mrb[9].mxu0  ;;  %v946_v16 = vsel %vm781_vm4, %v945_v11, -inf }
 0x4e4   :  { %947 = vmax.xlane.f32.xlu1 %v946_v16 }
 0x4e5   :  { %v1120_v17 = vadd.f32 %v1119_v14, %v1042_v13 }
 0x4e6   :  { %v1279_v18 = vpop.f32.mrb[10].mxu0 }
 0x4e7   :  { %v1283_v19 = vmul.f32 0.25, %v1279_v18  ;;  %v2178_v20 = vpop.f32.mrb[11].mxu0  ;;  %v1121_v21 = vsel %vm781_vm4, %v1120_v17, -inf }
 0x4e8   :  { %1122 = vmax.xlane.f32.xlu0 %v1121_v21 }
 0x4e9   :  { %v1284_v22 = vadd.f32 %v1283_v19, %v1042_v13 }
 0x4eb   :  { %v1285_v23 = vsel %vm781_vm4, %v1284_v22, -inf }
 0x4ec   :  { %1286 = vmax.xlane.f32.xlu0 %v1285_v23 }
 0x4fd   :  { %v784_v24 = vpop.xlane.xlu0 %783 }
 0x4fe   :  { %v785_v25 = vsub.f32 %v780_v5, %v784_v24  ;;  %v446_v5 = vld [vmem:[#allocation14 + $0x18] sm:$0xff] }
 0x4ff   :  { %v2291_v6 = vpack.c.bf16 %v446_v5, %v445_v4  ;;  %v460_v4 = vld [vmem:[%s3230_s15 + $0x30] sm:$0xff]  ;;  %v461_v5 = vld [vmem:[%s3230_s15 + $0x38] sm:$0xff] }
 0x500   :  { %v786_v26 = vmul.f32 1.442695, %v785_v25 }
 0x502   :  { %2355 = vpow2.f32 %v786_v26 }
 0x50c   :  { %v2356_v27 = vpop.eup %2355 }
 0x50d   :  { %v788_v28 = vsel %vm781_vm4, %v2356_v27, 0.0 }
 0x50e   :  { %789 = vadd.xlane.f32.xlu1 %v788_v28 }
 0x571   :  { %v948_v29 = vpop.xlane.xlu1 %947 }
 0x572   :  { %v949_v30 = vsub.f32 %v945_v11, %v948_v29 }
 0x574   :  { %v950_v31 = vmul.f32 1.442695, %v949_v30 }
 0x575   :  { %v1123_v32 = vpop.xlane.xlu0 %1122 }
 0x576   :  { %2357 = vpow2.f32 %v950_v31  ;;  %v1124_v33 = vsub.f32 %v1120_v17, %v1123_v32 }
 0x578   :  { %v1125_v34 = vmul.f32 1.442695, %v1124_v33  ;;  %v450_v33 = vld [vmem:[#allocation19 + $0x8] sm:$0xff] }
 0x579   :  { %v1287_v35 = vpop.xlane.xlu0 %1286 }
 0x57a   :  { %2359 = vpow2.f32 %v1125_v34  ;;  %v1288_v36 = vsub.f32 %v1284_v22, %v1287_v35  ;;  %v451_v35 = vld [vmem:[#allocation19 + $0x10] sm:$0xff] }
 0x57c   :  { %v1289_v37 = vmul.f32 1.442695, %v1288_v36  ;;  %v452_v36 = vld [vmem:[#allocation19 + $0x18] sm:$0xff] }
 0x57e   :  { %2361 = vpow2.f32 %v1289_v37  ;;  %v2299_v37 = vpack.c.bf16 %v452_v36, %v451_v35  ;;  %v239_v35 = vld [vmem:[%s3234_s19 + $0x10] sm:$0xff]  ;;  %v240_v36 = vld [vmem:[%s3234_s19 + $0x18] sm:$0xff] }
 0x580   :  { %v2358_v38 = vpop.eup %2357 }
 0x581   :  { %v952_v39 = vsel %vm781_vm4, %v2358_v38, 0.0 }
 0x582   :  { %953 = vadd.xlane.f32.xlu0 %v952_v39  ;;  %v455_v39 = vld [vmem:[%s3230_s15 + $0x8] sm:$0xff] }
 0x584   :  { %v2360_v40 = vpop.eup %2359 }
 0x585   :  { %v1127_v41 = vsel %vm781_vm4, %v2360_v40, 0.0 }
 0x586   :  { %1128 = vadd.xlane.f32.xlu1 %v1127_v41 }
 0x588   :  { %v2362_v42 = vpop.eup %2361 }
 0x589   :  { %v1291_v43 = vsel %vm781_vm4, %v2362_v42, 0.0 }
 0x58a   :  { %1292 = vadd.xlane.f32.xlu0 %v1291_v43 }
 0x597   :  { %958 = vrot.lane.b32.xlu1 %v3059_v56, %s2687_s22 }
 0x59b   :  { %v790_v44 = vpop.xlane.xlu1 %789 }
 0x59c   :  { %2363 = vrcp.f32 %v790_v44  ;;  %v458_v44 = vld [vmem:[%s3230_s15 + $0x20] sm:$0xff] }
 0x5a0   :  { %1297 = vrot.lane.b32.xlu0 %v3057_v55, %s2687_s22 }
 0x5a6   :  { %v2364_v45 = vpop.eup %2363 }
 0x5a7   :  { %v792_v46 = vmul.f32 %v2364_v45, %v2356_v27  ;;  %v459_v45 = vld [vmem:[%s3230_s15 + $0x28] sm:$0xff] }
 0x5a9   :  { %2152 = vmatmul.mubr.msk.f32.vlgmr.msra.gmra.mrb[6].mxu1 %vm781_vm4, %v792_v46  ;;  %v2311_v46 = vpack.c.bf16 %v459_v45, %v458_v44 }
 0x5aa   :  { %2161 = vmatprep.mubr.msk.f32.mxu1 %vm2686_vm1, %v2685_v50 }
 0x60f   :  { %v954_v49 = vpop.xlane.xlu0 %953 }
 0x610   :  { %2365 = vrcp.f32 %v954_v49 }
 0x613   :  { %v1129_v51 = vpop.xlane.xlu1 %1128 }
 0x614   :  { %2367 = vrcp.f32 %v1129_v51 }
 0x617   :  { %v959_v52 = vpop.permute.xlu1 %958  ;;  %v1293_v53 = vpop.xlane.xlu0 %1292 }
 0x618   :  { %2369 = vrcp.f32 %v1293_v53  ;;  %2160 = vmatpush3.msra.mxu1 %v959_v52 }
 0x619   :  { %2169 = vmatprep.subr.mxu1 %v2685_v50 }
 0x61a   :  { %v2366_v54 = vpop.eup %2365 }
 0x61b   :  { %v956_v56 = vmul.f32 %v2366_v54, %v2358_v38  ;;  %v1298_v59 = vpop.permute.xlu0 %1297  ;;  %v454_v38 = vld [vmem:[%s3230_s15] sm:$0xff] }
 0x61c   :  { %v2303_v41 = vpack.c.bf16 %v455_v39, %v454_v38  ;;  %v242_v38 = vld [vmem:[%s3236_s21] sm:$0xff]  ;;  %v243_v39 = vld [vmem:[%s3236_s21 + $0x8] sm:$0xff] }
 0x61d   :  { %2162 = vmatmul.mubr.msk.f32.vlgmr.msra.gmra.mrb[8].mxu1 %vm781_vm4, %v956_v56 }
 0x61e   :  { %v2368_v57 = vpop.eup %2367  ;;  %2170 = vmatpush3.msra.mxu1 %v3057_v55  ;;  %2171 = vmatprep.mubr.msk.f32.mxu1 %vm2686_vm1, %v2685_v50  ;;  %v443_v55 = vld [vmem:[#allocation14] sm:$0xff] }
 0x61f   :  { %v1131_v58 = vmul.f32 %v2368_v57, %v2360_v40  ;;  %2179 = vmatprep.subr.mxu1 %v2685_v50  ;;  %v2287_v3 = vpack.c.bf16 %v444_v2, %v443_v55  ;;  %v456_v40 = vld [vmem:[%s3230_s15 + $0x10] sm:$0xff] }
 0x621   :  { %2172 = vmatmul.mubr.msk.f32.vlgmr.msra.gmra.mrb[10].mxu1 %vm781_vm4, %v1131_v58  ;;  %2288 = vmatprep.subr.bf16.mxu0 %v2287_v3  ;;  %v1990_v58 = vld [vmem:[#allocation16] ss:$0 sm:$0xff] }
 0x622   :  { %v2370_v60 = vpop.eup %2369  ;;  %2180 = vmatpush3.msra.mxu1 %v1298_v59  ;;  %2181 = vmatprep.mubr.msk.f32.mxu1 %vm2686_vm1, %v2685_v50 }
 0x623   :  { %v1295_v62 = vmul.f32 %v2370_v60, %v2362_v42  ;;  %2290 = vmatpush3.bf16.msra.mxu0 %v2287_v3  ;;  %v457_v42 = vld [vmem:[%s3230_s15 + $0x18] sm:$0xff]  ;;  %s1941_s15 = sshll.u32 %s2690_s9, 4  ;;  %s1942_s15 = int_to_ptr.vmem [resolvable:$true] %s1941_s15 }
 0x624   :  { %2292 = vmatprep.subr.bf16.mxu0 %v2291_v6  ;;  %v2307_v43 = vpack.c.bf16 %v457_v42, %v456_v40  ;;  %v1991_v60 = vld [vmem:[#allocation17] ss:$0 sm:$0xff]  ;;  %v2327_v40 = vpack.c.bf16 %v243_v39, %v242_v38  ;;  %p2638_p10 = scmp.lt.s32.totalorder %s1942_s15, %s1942_s15 }
 0x625   :  { %2182 = vmatmul.mubr.msk.f32.vlgmr.msra.gmra.mrb[12].mxu1 %vm781_vm4, %v1295_v62 }
 0x627   :  { %2294 = vmatpush3.bf16.msra.mxu0 %v2291_v6  ;;  %v2315_v6 = vpack.c.bf16 %v461_v5, %v460_v4 }
 0x628   :  { %2304 = vmatprep.subr.bf16.mxu0 %v2303_v41 }
 0x67c   :  { %v862_v0 = vpop.f32.mrb[6].mxu1 }
 0x67d   :  { %v2153_v1 = vpop.f32.mrb[7].mxu1 }
 0x6f0   :  { %v1030_v8 = vpop.f32.mrb[8].mxu1 }
 0x6f1   :  { %1035 = vrot.lane.b32.xlu1 %v1030_v8, %s2689_s27  ;;  %v2163_v9 = vpop.f32.mrb[9].mxu1  ;;  %v1992_v8 = vld [vmem:[#allocation20] ss:$0 sm:$0xff] }
 0x6f4   :  { %v1201_v10 = vpop.f32.mrb[10].mxu1 }
 0x6f5   :  { %v2173_v11 = vpop.f32.mrb[11].mxu1 }
 0x6f8   :  { %v1369_v12 = vpop.f32.mrb[12].mxu1 }
 0x6f9   :  { %1374 = vrot.lane.b32.xlu1 %v1369_v12, %s2689_s27  ;;  %v2183_v13 = vpop.f32.mrb[13].mxu1 }
 0x763   :  { %v1036_v14 = vpop.permute.xlu1 %1035 }
 0x764   :  { %v1038_v15 = vsel %vm702_vm2, %v862_v0, %v1036_v14 }
 0x765   :  { %2192 = vmatprep.mubr.msk.f32.mxu0 %vm255_vm0, %v1038_v15  ;;  %v1995_v15 = vld [vmem:[#allocation22] ss:$0 sm:$0xff] }
 0x76b   :  { %v1375_v16 = vpop.permute.xlu1 %1374 }
 0x76c   :  { %v1377_v17 = vsel %vm702_vm2, %v1201_v10, %v1375_v16 }
 0x76d   :  { %2193 = vmatmul.mubr.msk.f32.vlgmr.msra.gmra.mrb[12].mxu0 %vm255_vm0, %v1377_v17 }
 0x76e   :  { %2306 = vmatpush3.bf16.msra.mxu0 %v2303_v41 }
 0x76f   :  { %2308 = vmatprep.subr.bf16.mxu0 %v2307_v43 }
 0x772   :  { %2310 = vmatpush3.bf16.msra.mxu0 %v2307_v43 }
 0x773   :  { %2312 = vmatprep.subr.bf16.mxu0 %v2311_v46 }
 0x776   :  { %2314 = vmatpush3.bf16.msra.mxu0 %v2311_v46 }
 0x777   :  { %2316 = vmatprep.subr.bf16.mxu0 %v2315_v6 }
 0x77a   :  { %2318 = vmatpush3.bf16.msra.mxu0 %v2315_v6 }
 0x840   :  { %v2194_v18 = vpop.f32.mrb[12].mxu0 }
 0x841   :  { %v1460_v19 = vadd.f32 %v2194_v18, %v3028_v48  ;;  %v1450_v20 = vpop.f32.mrb[13].mxu0 }
 0x842   :  { %v1459_v21 = vadd.f32 %v1450_v20, %v3026_v47  ;;  %v449_v47 = vld [vmem:[#allocation19] sm:$0xff] }
 0x843   :  { %v1464_v22 = vsel %vm255_vm0, %v1460_v19, 0.0  ;;  %v2295_v34 = vpack.c.bf16 %v450_v33, %v449_v47  ;;  %v237_v47 = vld [vmem:[%s3234_s19] sm:$0xff]  ;;  %v238_v33 = vld [vmem:[%s3234_s19 + $0x8] sm:$0xff] }
 0x844   :  { %1465 = vadd.xlane.f32.xlu1 %v1464_v22  ;;  %v1461_v23 = vsel %vm255_vm0, %v1459_v21, 0.0 }
 0x845   :  { %1462 = vadd.xlane.f32.xlu0 %v1461_v23  ;;  %2296 = vmatprep.subr.bf16.mxu1 %v2295_v34 }
 0x846   :  { %2298 = vmatpush3.bf16.msra.mxu1 %v2295_v34  ;;  %v2319_v34 = vpack.c.bf16 %v238_v33, %v237_v47 }
 0x847   :  { %2300 = vmatprep.subr.bf16.mxu1 %v2299_v37 }
 0x84a   :  { %2302 = vmatpush3.bf16.msra.mxu1 %v2299_v37  ;;  %v2323_v37 = vpack.c.bf16 %v240_v36, %v239_v35 }
 0x84b   :  { %2320 = vmatprep.subr.bf16.mxu1 %v2319_v34 }
 0x8d1   :  { %v1466_v24 = vpop.xlane.xlu1 %1465 }
 0x8d2   :  { %v1469_v25 = vmul.f32 0.03125, %v1466_v24  ;;  %v1463_v26 = vpop.xlane.xlu0 %1462 }
 0x8d3   :  { %v1468_v27 = vmul.f32 0.03125, %v1463_v26 }
 0x8d4   :  { %v1471_v28 = vsub.f32 %v1460_v19, %v1469_v25 }
 0x8d5   :  { %v1470_v29 = vsub.f32 %v1459_v21, %v1468_v27 }
 0x8d6   :  { %v1473_v32 = vmul.f32 %v1471_v28, %v1471_v28 }
 0x8d7   :  { %v1472_v30 = vmul.f32 %v1470_v29, %v1470_v29 }
 0x8d8   :  { %v1477_v48 = vsel %vm255_vm0, %v1473_v32, 0.0 }
 0x8d9   :  { %v1474_v31 = vsel %vm255_vm0, %v1472_v30, 0.0 }
 0x8da   :  { %1475 = vadd.xlane.f32.xlu0 %v1474_v31 }
 0x8de   :  { %1478 = vadd.xlane.f32.xlu0 %v1477_v48 }
 0x967   :  { %v1476_v49 = vpop.xlane.xlu0 %1475 }
 0x968   :  { %v1480_v51 = vmul.f32 0.03125, %v1476_v49 }
 0x96a   :  { %v1482_v52 = vadd.f32 1e-05, %v1480_v51  ;;  %v1998_v51 = vld [vmem:[%s3232_s17] ss:$0 sm:$0xff] }
 0x96b   :  { %v1479_v53 = vpop.xlane.xlu0 %1478 }
 0x96c   :  { %2371 = vrsqrt.f32 %v1482_v52  ;;  %v1481_v54 = vmul.f32 0.03125, %v1479_v53 }
 0x96e   :  { %v1483_v56 = vadd.f32 1e-05, %v1481_v54  ;;  %v1999_v54 = vld [vmem:[%s3233_s18] ss:$0 sm:$0xff] }
 0x970   :  { %2373 = vrsqrt.f32 %v1483_v56 }
 0x976   :  { %v2372_v57 = vpop.eup %2371 }
 0x977   :  { %v1486_v59 = vmul.f32 %v2372_v57, %v1470_v29 }
 0x979   :  { %v1494_v62 = vmul.f32 %v1990_v58, %v1486_v59 }
 0x97a   :  { %v2374_v0 = vpop.eup %2373 }
 0x97b   :  { %v1487_v1 = vmul.f32 %v2374_v0, %v1471_v28  ;;  %v1502_v55 = vadd.f32 %v1991_v60, %v1494_v62  ;;  %v244_v62 = vld [vmem:[%s3236_s21 + $0x10] sm:$0xff]  ;;  %v245_v0 = vld [vmem:[%s3236_s21 + $0x18] sm:$0xff]  ;;  %s2633_s21 = scalar_lea.vmem %s1942_s15, 256 }
 0x97c   :  { %p2634_p9 = scmp.ne.s32.totalorder %s1942_s15, %s2633_s21  ;;  %p2639_p11 = scmp.lt.s32.totalorder %s2633_s21, %s2633_s21 }
 0x97d   :  { %v1495_v2 = vmul.f32 %v1990_v58, %v1487_v1  ;;  %2203 = vmatprep.mubr.msk.f32.mxu1 %vm255_vm0, %v1502_v55  ;;  %v2331_v1 = vpack.c.bf16 %v245_v0, %v244_v62 }
 0x97e   :  { %p2640_p12 = por %p2639_p11, %p2638_p10 }
 0x97f   :  { %v1503_v3 = vadd.f32 %v1991_v60, %v1495_v2 }
 0x980   :  { %p2641_p13 = pnand %p2640_p12, %p2634_p9 }
 0x981   :  { %2204 = vmatmul.mubr.msk.f32.vlgmr.msra.gmra.mrb[14].mxu1 %vm255_vm0, %v1503_v3 }
 0x982   :  { %2322 = vmatpush3.bf16.msra.mxu1 %v2319_v34 }
 0x983   :  { %2324 = vmatprep.subr.bf16.mxu1 %v2323_v37 }
 0x986   :  { %2326 = vmatpush3.bf16.msra.mxu1 %v2323_v37 }
 0x987   :  { %2328 = vmatprep.subr.bf16.mxu1 %v2327_v40 }
 0xa54   :  { %v2205_v9 = vpop.f32.mrb[14].mxu1 }
 0xa55   :  { %v1588_v10 = vadd.f32 %v2205_v9, %v1992_v8  ;;  %v1582_v11 = vpop.f32.mrb[15].mxu1 }
 0xa56   :  { %v1583_v12 = vadd.f32 %v1992_v8, %v1582_v11 }
 0xa57   :  { %v1592_v14 = vmax.f32 %v1588_v10, 0.0 }
 0xa58   :  { %v1591_v13 = vmax.f32 %v1583_v12, 0.0 }
 0xa5a   :  { %2222 = vmatprep.mubr.msk.f32.mxu0 %vm1599_vm6, %v1591_v13 }
 0xa5b   :  { %2223 = vmatmul.mubr.msk.f32.vlgmr.msra.gmra.mrb[14].mxu0 %vm1599_vm6, %v1592_v14 }
 0xb2e   :  { %v2224_v16 = vpop.f32.mrb[14].mxu0 }
 0xb2f   :  { %v1678_v17 = vadd.f32 %v2224_v16, %v1995_v15  ;;  %v1672_v18 = vpop.f32.mrb[15].mxu0 }
 0xb30   :  { %v1673_v19 = vadd.f32 %v1995_v15, %v1672_v18 }
 0xb31   :  { %v1682_v20 = vadd.f32 %v1678_v17, %v1503_v3 }
 0xb32   :  { %v1681_v21 = vadd.f32 %v1673_v19, %v1502_v55  ;;  %v2000_v55 = vld [vmem:[%s3235_s20] ss:$0 sm:$0xff] }
 0xb33   :  { %v1686_v22 = vsel %vm255_vm0, %v1682_v20, 0.0 }
 0xb34   :  { %1687 = vadd.xlane.f32.xlu0 %v1686_v22  ;;  %v1683_v23 = vsel %vm255_vm0, %v1681_v21, 0.0 }
 0xb35   :  { %1684 = vadd.xlane.f32.xlu1 %v1683_v23 }
 0xbc1   :  { %v1688_v24 = vpop.xlane.xlu0 %1687 }
 0xbc2   :  { %v1690_v25 = vmul.f32 0.03125, %v1688_v24  ;;  %v1685_v26 = vpop.xlane.xlu1 %1684 }
 0xbc3   :  { %v1689_v27 = vmul.f32 0.03125, %v1685_v26 }
 0xbc4   :  { %v1692_v28 = vsub.f32 %v1682_v20, %v1690_v25 }
 0xbc5   :  { %v1691_v29 = vsub.f32 %v1681_v21, %v1689_v27 }
 0xbc6   :  { %v1694_v30 = vmul.f32 %v1692_v28, %v1692_v28 }
 0xbc7   :  { %v1693_v31 = vmul.f32 %v1691_v29, %v1691_v29 }
 0xbc8   :  { %v1698_v32 = vsel %vm255_vm0, %v1694_v30, 0.0 }
 0xbc9   :  { %1699 = vadd.xlane.f32.xlu0 %v1698_v32  ;;  %v1695_v48 = vsel %vm255_vm0, %v1693_v31, 0.0 }
 0xbca   :  { %1696 = vadd.xlane.f32.xlu1 %v1695_v48 }
 0xc56   :  { %v1700_v41 = vpop.xlane.xlu0 %1699 }
 0xc57   :  { %v1702_v42 = vmul.f32 0.03125, %v1700_v41  ;;  %v1697_v43 = vpop.xlane.xlu1 %1696 }
 0xc58   :  { %v1701_v44 = vmul.f32 0.03125, %v1697_v43 }
 0xc59   :  { %v1704_v45 = vadd.f32 1e-05, %v1702_v42 }
 0xc5a   :  { %v1703_v46 = vadd.f32 1e-05, %v1701_v44 }
 0xc5b   :  { %2375 = vrsqrt.f32 %v1704_v45 }
 0xc5c   :  { %2377 = vrsqrt.f32 %v1703_v46 }
 0xc65   :  { %v2376_v49 = vpop.eup %2375 }
 0xc66   :  { %v2378_v52 = vpop.eup %2377  ;;  %v1708_v53 = vmul.f32 %v2376_v49, %v1692_v28 }
 0xc67   :  { %v1707_v56 = vmul.f32 %v2378_v52, %v1691_v29 }
 0xc68   :  { %v1716_v57 = vmul.f32 %v1998_v51, %v1708_v53 }
 0xc69   :  { %v1715_v58 = vmul.f32 %v1998_v51, %v1707_v56 }
 0xc6a   :  { %v1724_v59 = vadd.f32 %v1999_v54, %v1716_v57 }
 0xc6b   :  { %v1723_v60 = vadd.f32 %v1999_v54, %v1715_v58 }
 0xc6c   :  { %1726 = vst.msk [vmem:[#allocation23 + $0x8] sm:$0xff] %vm255_vm0, %v1724_v59 }
 0xc6d   :  { %2233 = vmatprep.mubr.msk.f32.mxu1 %vm255_vm0, %v1723_v60  ;;  %1725 = vst.msk [vmem:[#allocation23] sm:$0xff] %vm255_vm0, %v1723_v60 }
 0xc6e   :  { %2234 = vmatmul.mubr.msk.f32.vlgmr.msra.gmra.mrb[16].mxu1 %vm255_vm0, %v1724_v59 }
 0xc6f   :  { %2330 = vmatpush3.bf16.msra.mxu1 %v2327_v40 }
 0xc70   :  { %2332 = vmatprep.subr.bf16.mxu1 %v2331_v1 }
 0xc73   :  { %2334 = vmatpush3.bf16.msra.mxu1 %v2331_v1 }
 0xd41   :  { %v2235_v2 = vpop.f32.mrb[16].mxu1 }
 0xd42   :  { %v1811_v3 = vadd.f32 %v2235_v2, %v2000_v55  ;;  %v1805_v4 = vpop.f32.mrb[17].mxu1 }
 0xd43   :  { %v1806_v5 = vadd.f32 %v2000_v55, %v1805_v4 }
 0xd44   :  { %v1815_v8 = vmax.f32 %v1811_v3, 0.0 }
 0xd45   :  { %v1814_v6 = vmax.f32 %v1806_v5, 0.0 }
 0xd47   :  { %2244 = vmatprep.mubr.msk.f32.mxu1 %vm255_vm0, %v1814_v6 }
 0xd48   :  { %2245 = vmatmul.mubr.msk.f32.vlgmr.msra.gmra.mrb[18].mxu1 %vm255_vm0, %v1815_v8 }
 0xd49   :  { %2644 = shalt.err (!%p2641_p13)
}
 0xd4a   :  { %s2645_s22 = scalar_lea.hbm %s3238_s23, 256 }
 0xd4b   :  { %p2646_p0 = scmp.ne.s32.totalorder %s3238_s23, %s2645_s22  ;;  %p2649_p1 = scmp.lt.u32.totalorder %s2645_s22, %s3238_s23 }
 0xd4d   :  { %p2651_p2 = pnand %p2649_p1, %p2646_p0 }
 0xd4f   :  { %2654 = shalt.err (!%p2651_p2)
}
 0xd50   :  { %1947 = dma.vmem_to_hbm [thread:$0]  %s1942_s15, 256, %s3238_s23, [#allocation5], %s3263_s26, %s3263_s26, %s2676_s8   ;;  %v1904_v9 = vshrl.u32 %v696_v61, 7  ;;  %v2003_v10 = vld [vmem:[#allocation2] ss:$0 sm:$0xff]  ;;  %vm1911_vm9 = vcmask 7168  }
 0xd51   :  { %vm1932_vm10 = vcmask 1040384   ;;  %vm1934_vm11 = vcmask 1024  }
 0xd52   :  { %vm1921_vm7 = vcmp.lt.s32.totalorder %v1904_v9, %v1040_v7  ;;  %vm1907_vm8 = vcmp.lt.s32.totalorder %v1904_v9, %v699_v63 }
 0xd53   :  { %v2008_v12 = vsel %vm1921_vm7, 1.0, %v2685_v50  ;;  %v2006_v15 = vsel %vm1907_vm8, 1.0, %v2685_v50 }
 0xe1b   :  { %v2246_v11 = vpop.f32.mrb[18].mxu1 }
 0xe1c   :  { %v1900_v13 = vadd.f32 %v2246_v11, %v2003_v10  ;;  %v1894_v14 = vpop.f32.mrb[19].mxu1 }
 0xe1d   :  { %v1895_v16 = vadd.f32 %v2003_v10, %v1894_v14 }
 0xe1e   :  { %v1924_v17 = vmul.f32 %v2008_v12, %v1900_v13 }
 0xe1f   :  { %v1910_v18 = vmul.f32 %v2006_v15, %v1895_v16 }
 0xe20   :  { %v1925_v19 = vsel %vm1911_vm9, %v1924_v17, 0.0 }
 0xe21   :  { %v1926_v20 = vrot.slane %v1925_v19, 4  ;;  %v1912_v21 = vsel %vm1911_vm9, %v1910_v18, 0.0 }
 0xe22   :  { %v1913_v61 = vrot.slane %v1912_v21, 4 }
 0xe23   :  { %v1927_v22 = vadd.f32 %v1926_v20, %v1925_v19 }
 0xe24   :  { %v1914_v7 = vadd.f32 %v1913_v61, %v1912_v21 }
 0xe25   :  { %v1928_v23 = vrot.slane %v1927_v22, 2 }
 0xe26   :  { %v1915_v24 = vrot.slane %v1914_v7, 2 }
 0xe27   :  { %v1929_v63 = vadd.f32 %v1928_v23, %v1927_v22 }
 0xe28   :  { %v1916_v25 = vadd.f32 %v1915_v24, %v1914_v7 }
 0xe29   :  { %v1930_v26 = vrot.slane %v1929_v63, 1 }
 0xe2a   :  { %v1917_v27 = vrot.slane %v1916_v25, 1 }
 0xe2b   :  { %v1931_v28 = vadd.f32 %v1930_v26, %v1929_v63 }
 0xe2c   :  { %v1918_v29 = vadd.f32 %v1917_v27, %v1916_v25 }
 0xe2e   :  { %v1933_v50 = vsel %vm1932_vm10, %v1918_v29, %v1931_v28 }
 0xe2f   :  { %1935 = vst.msk [vmem:[%s3239_s24] sm:$0x3] %vm1934_vm11, %v1933_v50 }
 0xe30   :  { %2669 = dma.done.wait [#allocation5], 256  }
 0xe31   :  { %2670 = vsyncadd [#allocation5], 4294967040 }
 0xe32   :  { %1955 = vsyncpa [#allocation4], 1 }
 0xe33   :  { %1956 = vsyncpa [#allocation9], 1 }
 0xe34   :  { %1957 = vsyncpa [#allocation12], 1 }
 0xe35   :  { %1958 = vsyncpa [#allocation15], 1 }
 0xe36   :  { %1959 = vsyncpa [#allocation18], 1 }
 0xe37   :  { %1960 = vsyncpa [#allocation21], 1 }
 0xe38   :  { %1961 = vsyncpa [#allocation5], 1 }
 0xe39   :  { %1962 = vsyncpa [#allocation6], 1 }

</bundles_post_ra>
